<compile_context>
chip_gen: v7x
topology: tpu7x:2x2x1
jax: 0.10.0
libtpu: 0.0.40
codegen_flags: <defaults>
</compile_context>

<pallas_src>
import numpy as np
import jax
import jax.numpy as jnp
from jax.experimental import pallas as pl
from jax.experimental.pallas import tpu as pltpu


# ---------------------------------------------------------------------------
# In-kernel helpers.  Layout is channel-major: rows = channels (sublanes),
# lanes = flattened b*H*W + h*W + w  (N = B*H*W).
# ---------------------------------------------------------------------------
def _make_shift_masks(pos_ref, H, W):
    """Return the 9 (mask, flat_offset) pairs of a 3x3 'same' conv, (ky, kx) order.

    pos_ref holds per-lane (h, w) coordinates.  The masks mark lanes whose
    shifted source lies inside the (H, W) image; every cyclic-roll wrap-around
    (including across batch boundaries) falls exactly on masked-out lanes, so
    mask * roll(x) equals the zero-padded shifted window."""
    pos = pos_ref[...]
    h_idx = pos[0:1, :]
    w_idx = pos[1:2, :]
    masks = []
    for ky in range(3):
        for kx in range(3):
            dy, dx = ky - 1, kx - 1
            conds = []
            if dy == -1:
                conds.append(h_idx >= 1)
            elif dy == 1:
                conds.append(h_idx <= H - 2)
            if dx == -1:
                conds.append(w_idx >= 1)
            elif dx == 1:
                conds.append(w_idx <= W - 2)
            mask = None
            for cond in conds:
                mask = cond if mask is None else jnp.logical_and(mask, cond)
            masks.append((mask, dy * W + dx))
    return masks


def _build_patches(src, masks, N):
    """src: (c, N) f32 -> (9*c, N) bf16 im2col patch matrix (channel-major).

    Each of the 9 kernel offsets is a lane rotation (XLU) + border mask; no
    VMEM scratch / strided-slice copies are involved."""
    pieces = []
    for mask, off in masks:
        shifted = src if off == 0 else pltpu.roll(src, (-off) % N, 1)
        pieces.append(shifted if mask is None else jnp.where(mask, shifted, 0.0))
    return jnp.concatenate(pieces, axis=0).astype(jnp.bfloat16)


def _gru_step(x_cm, h_cm, wxT, b, whgT, whcT, masks, ch, N):
    """One ConvGRU cell update in channel-major layout.

    x_cm (cin, N) f32, h_cm (ch, N) f32.  Weights are transposed fused im2col:
      wxT  (3*ch, 9*cin) bf16   x-side conv for [reset|update|candidate]
      b    (3*ch, 1)     f32    conv biases (folded into the x contribution)
      whgT (2*ch, 9*ch)  bf16   h-side conv for [reset|update]
      whcT (ch,   9*ch)  bf16   h-side conv for the candidate
    """
    px = _build_patches(x_cm, masks, N)                       # (9*cin, N)
    ph = _build_patches(h_cm, masks, N)                       # (9*ch,  N)
    xc = jnp.dot(wxT, px, preferred_element_type=jnp.float32) + b   # (3ch, N)
    gates = jax.nn.sigmoid(
        jnp.dot(whgT, ph, preferred_element_type=jnp.float32) + xc[:2 * ch])
    reset, update = gates[:ch], gates[ch:]
    prh = _build_patches(reset * h_cm, masks, N)              # (9*ch, N)
    cand = jnp.tanh(
        jnp.dot(whcT, prh, preferred_element_type=jnp.float32) + xc[2 * ch:])
    return h_cm + update * (cand - h_cm)                      # (1-u)*h + u*c


def _make_convgru_kernel(hidden_dims, H, W, B):
    """Fused multi-layer ConvGRU recurrence, grid=(T,), T serial."""
    N = B * H * W
    n_layers = len(hidden_dims)

    def kernel(*refs):
        x_ref, pos_ref = refs[0], refs[1]
        w_refs = refs[2:2 + 4 * n_layers]
        out_ref = refs[2 + 4 * n_layers]
        h_scrs = refs[3 + 4 * n_layers:]
        t = pl.program_id(0)

        @pl.when(t == 0)
        def _init():
            for hs in h_scrs:
                hs[...] = jnp.zeros_like(hs)

        masks = _make_shift_masks(pos_ref, H, W)

        cur = x_ref[...]                                      # (cin, N) f32
        for layer, ch in enumerate(hidden_dims):
            wxT, b, whgT, whcT = w_refs[4 * layer:4 * layer + 4]
            h_next = _gru_step(cur, h_scrs[layer][...], wxT[...], b[...],
                               whgT[...], whcT[...], masks, ch, N)
            h_scrs[layer][...] = h_next
            cur = h_next

        # Output block is resident across T; write it once at the last step.
        @pl.when(t == pl.num_programs(0) - 1)
        def _final():
            out_ref[...] = cur                                # (ch_last, N)

    return kernel


# ---------------------------------------------------------------------------
# fc1 -> fc2 -> softmax head.
# ---------------------------------------------------------------------------
def fc_softmax_kernel(x_ref, w1_ref, b1_ref, w2_ref, b2_ref, out_ref):
    h = jnp.dot(x_ref[...].astype(jnp.bfloat16), w1_ref[...],
                preferred_element_type=jnp.float32) + b1_ref[...]
    logits = jnp.dot(h.astype(jnp.bfloat16), w2_ref[...],
                     preferred_element_type=jnp.float32) + b2_ref[...]
    m = jnp.max(logits, axis=-1, keepdims=True)
    e = jnp.exp(logits - m)
    out_ref[...] = e * pl.reciprocal(jnp.sum(e, axis=-1, keepdims=True),
                                     approx=True)


def fc_softmax(feat, w1, b1, w2, b2):
    B, F = feat.shape
    Hd = w1.shape[1]
    C = w2.shape[1]
    return pl.pallas_call(
        fc_softmax_kernel,
        out_shape=jax.ShapeDtypeStruct((B, C), jnp.float32),
        grid=(1,),
        in_specs=[
            pl.BlockSpec((B, F), lambda i: (0, 0)),
            pl.BlockSpec((F, Hd), lambda i: (0, 0)),
            pl.BlockSpec((1, Hd), lambda i: (0, 0)),
            pl.BlockSpec((Hd, C), lambda i: (0, 0)),
            pl.BlockSpec((1, C), lambda i: (0, 0)),
        ],
        out_specs=pl.BlockSpec((B, C), lambda i: (0, 0)),
    )(feat, w1, b1, w2, b2)


# ---------------------------------------------------------------------------
# Parameter packing / glue.
# ---------------------------------------------------------------------------
def _pack_cell_params(wg, bg, wc, bc, cin, ch):
    """Torch Conv2d weights (O, I, 3, 3) -> transposed fused im2col weights."""
    def flat(w):          # (O, I, 3, 3) -> (O, 9*I); col = (ky*3+kx)*I + i
        o, i = w.shape[0], w.shape[1]
        return jnp.transpose(w, (0, 2, 3, 1)).reshape(o, 9 * i)

    wxT = jnp.concatenate([flat(wg[:, :cin]), flat(wc[:, :cin])],
                          axis=0).astype(jnp.bfloat16)            # (3ch, 9cin)
    b_all = jnp.concatenate([bg, bc]).reshape(3 * ch, 1).astype(jnp.float32)
    whgT = flat(wg[:, cin:]).astype(jnp.bfloat16)                 # (2ch, 9ch)
    whcT = flat(wc[:, cin:]).astype(jnp.bfloat16)                 # (ch,  9ch)
    return wxT, b_all, whgT, whcT


def convgru_net_forward(x_btchw, params):
    """x_btchw: (B, T, C, H, W) float32 -> softmax output (B, class_num)."""
    B, T, C, H, W = x_btchw.shape
    hidden_dims = params["hidden_dims"]
    HW = H * W
    N = B * HW
    ch_last = hidden_dims[-1]

    # Channel-major with batch folded into lanes: x_cm[t, c, b*HW + h*W + w].
    x_cm = jnp.transpose(x_btchw, (1, 2, 0, 3, 4)).reshape(T, C, N)

    # Per-lane (h, w) coordinates for the conv border masks (avoids vector
    # integer div/mod inside the kernel).
    s = jnp.arange(N, dtype=jnp.int32) % HW
    pos = jnp.stack([s // W, s % W]).astype(jnp.int32)            # (2, N)

    args = [x_cm, pos]
    in_specs = [pl.BlockSpec((None, C, N), lambda t: (t, 0, 0)),
                pl.BlockSpec((2, N), lambda t: (0, 0))]
    cin = C
    for layer, ch in enumerate(hidden_dims):
        wg, bg, wc, bc = params["cells_torch"][layer]
        for w in _pack_cell_params(wg, bg, wc, bc, cin, ch):
            args.append(w)
            in_specs.append(pl.BlockSpec(w.shape, lambda t: (0, 0)))
        cin = ch

    h_last = pl.pallas_call(
        _make_convgru_kernel(hidden_dims, H, W, B),
        out_shape=jax.ShapeDtypeStruct((ch_last, N), jnp.float32),
        grid_spec=pltpu.PrefetchScalarGridSpec(
            num_scalar_prefetch=0,
            grid=(T,),
            in_specs=in_specs,
            out_specs=pl.BlockSpec((ch_last, N), lambda t: (0, 0)),
            scratch_shapes=[pltpu.VMEM((ch, N), jnp.float32)
                            for ch in hidden_dims],
        ),
        compiler_params=pltpu.CompilerParams(
            dimension_semantics=("arbitrary",),
            vmem_limit_bytes=32 * 1024 * 1024),
    )(*args)

    # torch flattens the (B, C, H, W) hidden state channel-major.
    feat = (h_last.reshape(ch_last, B, HW).transpose(1, 0, 2)
            .reshape(B, ch_last * HW))
    return fc_softmax(feat,
                      params["fc1_w"].T.astype(jnp.bfloat16),
                      params["fc1_b"].reshape(1, -1),
                      params["fc2_w"].T.astype(jnp.bfloat16),
                      params["fc2_b"].reshape(1, -1))


def init_params(key, input_dim, hidden_dims, class_num):
    keys = jax.random.split(key, 4 * len(hidden_dims) + 4)
    ki = 0
    cells_torch = []
    cur_in = input_dim
    for ch in hidden_dims:
        wg = 0.1 * jax.random.normal(keys[ki], (2 * ch, cur_in + ch, 3, 3), jnp.float32); ki += 1
        bg = 0.1 * jax.random.normal(keys[ki], (2 * ch,), jnp.float32); ki += 1
        wc = 0.1 * jax.random.normal(keys[ki], (ch, cur_in + ch, 3, 3), jnp.float32); ki += 1
        bc = 0.1 * jax.random.normal(keys[ki], (ch,), jnp.float32); ki += 1
        cells_torch.append((wg, bg, wc, bc))
        cur_in = ch
    # fc sizes are hardcoded in the torch module: Linear(512, 512), Linear(512, class_num)
    fc1_w = 0.05 * jax.random.normal(keys[ki], (512, 512), jnp.float32); ki += 1
    fc1_b = 0.05 * jax.random.normal(keys[ki], (512,), jnp.float32); ki += 1
    fc2_w = 0.05 * jax.random.normal(keys[ki], (class_num, 512), jnp.float32); ki += 1
    fc2_b = 0.05 * jax.random.normal(keys[ki], (class_num,), jnp.float32); ki += 1
    return {"cells_torch": cells_torch, "hidden_dims": list(hidden_dims),
            "input_dim": input_dim,
            "fc1_w": fc1_w, "fc1_b": fc1_b, "fc2_w": fc2_w, "fc2_b": fc2_b}


# ---------------------------------------------------------------------------
# Pure-JAX reference (mirrors the PyTorch forward, f32 'highest' precision).
# ---------------------------------------------------------------------------
def ref_forward(x_btchw, params):
    hp = jax.lax.Precision.HIGHEST

    def conv(x_nchw, w_oihw, b):
        out = jax.lax.conv_general_dilated(
            x_nchw, w_oihw, window_strides=(1, 1), padding=((1, 1), (1, 1)),
            dimension_numbers=("NCHW", "OIHW", "NCHW"), precision=hp)
        return out + b[None, :, None, None]

    B, T, C, H, W = x_btchw.shape
    cur = x_btchw
    h = None
    for layer, ch in enumerate(params["hidden_dims"]):
        wg, bg, wc, bc = params["cells_torch"][layer]
        h = jnp.zeros((B, ch, H, W), jnp.float32)
        outs = []
        for t in range(T):
            xt = cur[:, t]
            g = conv(jnp.concatenate([xt, h], axis=1), wg, bg)
            r = jax.nn.sigmoid(g[:, :ch])
            u = jax.nn.sigmoid(g[:, ch:])
            c = jnp.tanh(conv(jnp.concatenate([xt, r * h], axis=1), wc, bc))
            h = (1.0 - u) * h + u * c
            outs.append(h)
        cur = jnp.stack(outs, axis=1)
    feat = h.reshape(B, -1)
    o = jnp.dot(feat, params["fc1_w"].T, precision=hp) + params["fc1_b"]
    o = jnp.dot(o, params["fc2_w"].T, precision=hp) + params["fc2_b"]
    return jax.nn.softmax(o, axis=-1)


if __name__ == "__main__":
    # fc1 input is hardcoded to 2^(3+3+3)=512 in the torch module, which
    # requires hidden_dim[-1] * H * W == 512  ->  8 * 8 * 8.
    B, T, C, H, W = 2, 4, 4, 8, 8
    hidden_dims = [4, 8]
    class_num = 20

    key = jax.random.PRNGKey(0)
    pkey, xkey = jax.random.split(key)
    params = init_params(pkey, C, hidden_dims, class_num)
    x = jax.random.normal(xkey, (B, T, C, H, W), jnp.float32)

    fwd = jax.jit(lambda xx: convgru_net_forward(xx, params))
    out = jax.block_until_ready(fwd(x))

    ref = jax.block_until_ready(ref_forward(x, params))
    # Kernel matmuls use bf16 MXU operands (f32 accumulation); tolerance is
    # set for bf16-vs-f32 drift through the T=4, 2-layer recurrence.
    np.testing.assert_allclose(np.asarray(out), np.asarray(ref),
                               atol=1e-2, rtol=5e-2)

    print("KERNEL_OK")
</pallas_src>

<mosaic_0001>
module attributes {stable_mosaic.version = 11 : i64} {
  func.func @fc_softmax_kernel(%arg0: i32, %arg1: memref<2x512xf32, #tpu.memory_space<vmem>>, %arg2: memref<512x512xbf16, #tpu.memory_space<vmem>>, %arg3: memref<1x512xf32, #tpu.memory_space<vmem>>, %arg4: memref<512x20xbf16, #tpu.memory_space<vmem>>, %arg5: memref<1x20xf32, #tpu.memory_space<vmem>>, %arg6: memref<2x20xf32, #tpu.memory_space<vmem>>) attributes {dimension_semantics = [#tpu.dimension_semantics<arbitrary>], iteration_bounds = array<i64: 1>, scalar_prefetch = 0 : i64, scratch_operands = 0 : i64, tpu.core_type = #tpu.core_type<tc>, window_params = [{pipeline_mode = #tpu.pipeline_mode<synchronous>, transform_indices = @transform_0, window_bounds = array<i64: 2, 512>}, {pipeline_mode = #tpu.pipeline_mode<synchronous>, transform_indices = @transform_1, window_bounds = array<i64: 512, 512>}, {pipeline_mode = #tpu.pipeline_mode<synchronous>, transform_indices = @transform_2, window_bounds = array<i64: 1, 512>}, {pipeline_mode = #tpu.pipeline_mode<synchronous>, transform_indices = @transform_3, window_bounds = array<i64: 512, 20>}, {pipeline_mode = #tpu.pipeline_mode<synchronous>, transform_indices = @transform_4, window_bounds = array<i64: 1, 20>}, {pipeline_mode = #tpu.pipeline_mode<synchronous>, transform_indices = @transform_5, window_bounds = array<i64: 2, 20>}]} {
    %c0 = arith.constant 0 : index
    %c0_0 = arith.constant 0 : index
    %0 = vector.load %arg1[%c0, %c0_0] : memref<2x512xf32, #tpu.memory_space<vmem>>, vector<2x512xf32>
    %1 = arith.truncf %0 : vector<2x512xf32> to vector<2x512xbf16>
    %c0_1 = arith.constant 0 : index
    %c0_2 = arith.constant 0 : index
    %2 = vector.load %arg2[%c0_1, %c0_2] : memref<512x512xbf16, #tpu.memory_space<vmem>>, vector<512x512xbf16>
    %cst = arith.constant dense<0.000000e+00> : vector<2x512xf32>
    %3 = tpu.matmul %1, %2, %cst {dimension_numbers = #tpu.dot_dimension_numbers<[1], [0], [0], [1], [0, 0, 1, 1], [], []>} : vector<2x512xbf16>, vector<512x512xbf16>, vector<2x512xf32> -> vector<2x512xf32>
    %c0_3 = arith.constant 0 : index
    %c0_4 = arith.constant 0 : index
    %4 = vector.load %arg3[%c0_3, %c0_4] : memref<1x512xf32, #tpu.memory_space<vmem>>, vector<1x512xf32>
    %5 = vector.broadcast %4 : vector<1x512xf32> to vector<2x512xf32>
    %6 = arith.addf %3, %5 : vector<2x512xf32>
    %7 = arith.truncf %6 : vector<2x512xf32> to vector<2x512xbf16>
    %c0_5 = arith.constant 0 : index
    %c0_6 = arith.constant 0 : index
    %8 = vector.load %arg4[%c0_5, %c0_6] : memref<512x20xbf16, #tpu.memory_space<vmem>>, vector<512x20xbf16>
    %cst_7 = arith.constant dense<0.000000e+00> : vector<2x20xf32>
    %9 = tpu.matmul %7, %8, %cst_7 {dimension_numbers = #tpu.dot_dimension_numbers<[1], [0], [0], [1], [0, 0, 1, 1], [], []>} : vector<2x512xbf16>, vector<512x20xbf16>, vector<2x20xf32> -> vector<2x20xf32>
    %c0_8 = arith.constant 0 : index
    %c0_9 = arith.constant 0 : index
    %10 = vector.load %arg5[%c0_8, %c0_9] : memref<1x20xf32, #tpu.memory_space<vmem>>, vector<1x20xf32>
    %11 = vector.broadcast %10 : vector<1x20xf32> to vector<2x20xf32>
    %12 = arith.addf %9, %11 : vector<2x20xf32>
    %cst_10 = arith.constant dense<0xFF800000> : vector<2xf32>
    %13 = vector.multi_reduction <maximumf>, %12, %cst_10 [1] : vector<2x20xf32> to vector<2xf32>
    %14 = vector.shape_cast %13 : vector<2xf32> to vector<2x1xf32>
    %15 = vector.broadcast %14 : vector<2x1xf32> to vector<2x20xf32>
    %16 = arith.subf %12, %15 : vector<2x20xf32>
    %17 = math.exp %16 : vector<2x20xf32>
    %cst_11 = arith.constant dense<0.000000e+00> : vector<2xf32>
    %18 = vector.multi_reduction <add>, %17, %cst_11 [1] : vector<2x20xf32> to vector<2xf32>
    %19 = vector.shape_cast %18 : vector<2xf32> to vector<2x1xf32>
    %20 = tpu.reciprocal %19 {approx = true} : vector<2x1xf32> -> vector<2x1xf32>
    %21 = vector.broadcast %20 : vector<2x1xf32> to vector<2x20xf32>
    %22 = arith.mulf %17, %21 : vector<2x20xf32>
    %c0_12 = arith.constant 0 : index
    %c0_13 = arith.constant 0 : index
    %23 = vector.load %arg6[%c0_12, %c0_13] : memref<2x20xf32, #tpu.memory_space<vmem>>, vector<2x20xf32>
    tpu.vector_store %arg6[%c0_12, %c0_13], %22 {strides = array<i32>} : memref<2x20xf32, #tpu.memory_space<vmem>>, vector<2x20xf32>,
    return
  }
  func.func @transform_0(%arg0: i32) -> (i32, i32) {
    %c0_i32 = arith.constant 0 : i32
    %c0_i32_0 = arith.constant 0 : i32
    %c0_i32_1 = arith.constant 0 : i32
    return %c0_i32, %c0_i32_0 : i32, i32
  }
  func.func @transform_1(%arg0: i32) -> (i32, i32) {
    %c0_i32 = arith.constant 0 : i32
    %c0_i32_0 = arith.constant 0 : i32
    %c0_i32_1 = arith.constant 0 : i32
    return %c0_i32, %c0_i32_0 : i32, i32
  }
  func.func @transform_2(%arg0: i32) -> (i32, i32) {
    %c0_i32 = arith.constant 0 : i32
    %c0_i32_0 = arith.constant 0 : i32
    %c0_i32_1 = arith.constant 0 : i32
    return %c0_i32, %c0_i32_0 : i32, i32
  }
  func.func @transform_3(%arg0: i32) -> (i32, i32) {
    %c0_i32 = arith.constant 0 : i32
    %c0_i32_0 = arith.constant 0 : i32
    %c0_i32_1 = arith.constant 0 : i32
    return %c0_i32, %c0_i32_0 : i32, i32
  }
  func.func @transform_4(%arg0: i32) -> (i32, i32) {
    %c0_i32 = arith.constant 0 : i32
    %c0_i32_0 = arith.constant 0 : i32
    %c0_i32_1 = arith.constant 0 : i32
    return %c0_i32, %c0_i32_0 : i32, i32
  }
  func.func @transform_5(%arg0: i32) -> (i32, i32) {
    %c0_i32 = arith.constant 0 : i32
    %c0_i32_0 = arith.constant 0 : i32
    %c0_i32_1 = arith.constant 0 : i32
    return %c0_i32, %c0_i32_0 : i32, i32
  }
}

module attributes {stable_mosaic.version = 11 : i64} {
  func.func @kernel(%arg0: i32, %arg1: memref<1x4x128xf32, #tpu.memory_space<vmem>>, %arg2: memref<2x128xi32, #tpu.memory_space<vmem>>, %arg3: memref<12x36xbf16, #tpu.memory_space<vmem>>, %arg4: memref<12x1xf32, #tpu.memory_space<vmem>>, %arg5: memref<8x36xbf16, #tpu.memory_space<vmem>>, %arg6: memref<4x36xbf16, #tpu.memory_space<vmem>>, %arg7: memref<24x36xbf16, #tpu.memory_space<vmem>>, %arg8: memref<24x1xf32, #tpu.memory_space<vmem>>, %arg9: memref<16x72xbf16, #tpu.memory_space<vmem>>, %arg10: memref<8x72xbf16, #tpu.memory_space<vmem>>, %arg11: memref<8x128xf32, #tpu.memory_space<vmem>>, %arg12: memref<4x128xf32, #tpu.memory_space<vmem>>, %arg13: memref<8x128xf32, #tpu.memory_space<vmem>>) attributes {dimension_semantics = [#tpu.dimension_semantics<arbitrary>], iteration_bounds = array<i64: 4>, scalar_prefetch = 0 : i64, scratch_operands = 2 : i64, tpu.core_type = #tpu.core_type<tc>, window_params = [{transform_indices = @transform_0, window_bounds = array<i64: 1, 4, 128>}, {pipeline_mode = #tpu.pipeline_mode<synchronous>, transform_indices = @transform_1, window_bounds = array<i64: 2, 128>}, {pipeline_mode = #tpu.pipeline_mode<synchronous>, transform_indices = @transform_2, window_bounds = array<i64: 12, 36>}, {pipeline_mode = #tpu.pipeline_mode<synchronous>, transform_indices = @transform_3, window_bounds = array<i64: 12, 1>}, {pipeline_mode = #tpu.pipeline_mode<synchronous>, transform_indices = @transform_4, window_bounds = array<i64: 8, 36>}, {pipeline_mode = #tpu.pipeline_mode<synchronous>, transform_indices = @transform_5, window_bounds = array<i64: 4, 36>}, {pipeline_mode = #tpu.pipeline_mode<synchronous>, transform_indices = @transform_6, window_bounds = array<i64: 24, 36>}, {pipeline_mode = #tpu.pipeline_mode<synchronous>, transform_indices = @transform_7, window_bounds = array<i64: 24, 1>}, {pipeline_mode = #tpu.pipeline_mode<synchronous>, transform_indices = @transform_8, window_bounds = array<i64: 16, 72>}, {pipeline_mode = #tpu.pipeline_mode<synchronous>, transform_indices = @transform_9, window_bounds = array<i64: 8, 72>}, {pipeline_mode = #tpu.pipeline_mode<synchronous>, transform_indices = @transform_10, window_bounds = array<i64: 8, 128>}]} {
    %c0_i32 = arith.constant 0 : i32
    %0 = arith.cmpi eq, %arg0, %c0_i32 : i32
    %1 = arith.extui %0 : i1 to i32
    %c0_i32_0 = arith.constant 0 : i32
    %2 = arith.cmpi ne, %1, %c0_i32_0 : i32
    scf.if %2 {
      %cst_136 = arith.constant 0.000000e+00 : f32
      %345 = vector.broadcast %cst_136 : f32 to vector<4x128xf32>
      %c0_137 = arith.constant 0 : index
      %c0_138 = arith.constant 0 : index
      %346 = vector.load %arg12[%c0_137, %c0_138] : memref<4x128xf32, #tpu.memory_space<vmem>>, vector<4x128xf32>
      tpu.vector_store %arg12[%c0_137, %c0_138], %345 {strides = array<i32>} : memref<4x128xf32, #tpu.memory_space<vmem>>, vector<4x128xf32>,
      %cst_139 = arith.constant 0.000000e+00 : f32
      %347 = vector.broadcast %cst_139 : f32 to vector<8x128xf32>
      %c0_140 = arith.constant 0 : index
      %c0_141 = arith.constant 0 : index
      %348 = vector.load %arg13[%c0_140, %c0_141] : memref<8x128xf32, #tpu.memory_space<vmem>>, vector<8x128xf32>
      tpu.vector_store %arg13[%c0_140, %c0_141], %347 {strides = array<i32>} : memref<8x128xf32, #tpu.memory_space<vmem>>, vector<8x128xf32>,
    } else {
    }
    %c0 = arith.constant 0 : index
    %c0_1 = arith.constant 0 : index
    %3 = vector.load %arg2[%c0, %c0_1] : memref<2x128xi32, #tpu.memory_space<vmem>>, vector<2x128xi32>
    %4 = vector.extract_strided_slice %3 {offsets = [0, 0], sizes = [1, 128], strides = [1, 1]} : vector<2x128xi32> to vector<1x128xi32>
    %5 = vector.extract_strided_slice %3 {offsets = [1, 0], sizes = [1, 128], strides = [1, 1]} : vector<2x128xi32> to vector<1x128xi32>
    %c1_i32 = arith.constant 1 : i32
    %6 = vector.broadcast %c1_i32 : i32 to vector<1x128xi32>
    %7 = arith.cmpi sge, %4, %6 : vector<1x128xi32>
    %c1_i32_2 = arith.constant 1 : i32
    %8 = vector.broadcast %c1_i32_2 : i32 to vector<1x128xi32>
    %9 = arith.cmpi sge, %5, %8 : vector<1x128xi32>
    %10 = arith.andi %7, %9 : vector<1x128xi1>
    %c1_i32_3 = arith.constant 1 : i32
    %11 = vector.broadcast %c1_i32_3 : i32 to vector<1x128xi32>
    %12 = arith.cmpi sge, %4, %11 : vector<1x128xi32>
    %c1_i32_4 = arith.constant 1 : i32
    %13 = vector.broadcast %c1_i32_4 : i32 to vector<1x128xi32>
    %14 = arith.cmpi sge, %4, %13 : vector<1x128xi32>
    %c6_i32 = arith.constant 6 : i32
    %15 = vector.broadcast %c6_i32 : i32 to vector<1x128xi32>
    %16 = arith.cmpi sle, %5, %15 : vector<1x128xi32>
    %17 = arith.andi %14, %16 : vector<1x128xi1>
    %c1_i32_5 = arith.constant 1 : i32
    %18 = vector.broadcast %c1_i32_5 : i32 to vector<1x128xi32>
    %19 = arith.cmpi sge, %5, %18 : vector<1x128xi32>
    %c6_i32_6 = arith.constant 6 : i32
    %20 = vector.broadcast %c6_i32_6 : i32 to vector<1x128xi32>
    %21 = arith.cmpi sle, %5, %20 : vector<1x128xi32>
    %c6_i32_7 = arith.constant 6 : i32
    %22 = vector.broadcast %c6_i32_7 : i32 to vector<1x128xi32>
    %23 = arith.cmpi sle, %4, %22 : vector<1x128xi32>
    %c1_i32_8 = arith.constant 1 : i32
    %24 = vector.broadcast %c1_i32_8 : i32 to vector<1x128xi32>
    %25 = arith.cmpi sge, %5, %24 : vector<1x128xi32>
    %26 = arith.andi %23, %25 : vector<1x128xi1>
    %c6_i32_9 = arith.constant 6 : i32
    %27 = vector.broadcast %c6_i32_9 : i32 to vector<1x128xi32>
    %28 = arith.cmpi sle, %4, %27 : vector<1x128xi32>
    %c6_i32_10 = arith.constant 6 : i32
    %29 = vector.broadcast %c6_i32_10 : i32 to vector<1x128xi32>
    %30 = arith.cmpi sle, %4, %29 : vector<1x128xi32>
    %c6_i32_11 = arith.constant 6 : i32
    %31 = vector.broadcast %c6_i32_11 : i32 to vector<1x128xi32>
    %32 = arith.cmpi sle, %5, %31 : vector<1x128xi32>
    %33 = arith.andi %30, %32 : vector<1x128xi1>
    %c0_12 = arith.constant 0 : index
    %c0_13 = arith.constant 0 : index
    %c0_14 = arith.constant 0 : index
    %34 = vector.load %arg1[%c0_12, %c0_13, %c0_14] : memref<1x4x128xf32, #tpu.memory_space<vmem>>, vector<1x4x128xf32>
    %35 = vector.shape_cast %34 : vector<1x4x128xf32> to vector<4x128xf32>
    %c0_15 = arith.constant 0 : index
    %c0_16 = arith.constant 0 : index
    %36 = vector.load %arg12[%c0_15, %c0_16] : memref<4x128xf32, #tpu.memory_space<vmem>>, vector<4x128xf32>
    %c0_17 = arith.constant 0 : index
    %c0_18 = arith.constant 0 : index
    %37 = vector.load %arg3[%c0_17, %c0_18] : memref<12x36xbf16, #tpu.memory_space<vmem>>, vector<12x36xbf16>
    %c0_19 = arith.constant 0 : index
    %c0_20 = arith.constant 0 : index
    %38 = vector.load %arg4[%c0_19, %c0_20] : memref<12x1xf32, #tpu.memory_space<vmem>>, vector<12x1xf32>
    %c0_21 = arith.constant 0 : index
    %c0_22 = arith.constant 0 : index
    %39 = vector.load %arg5[%c0_21, %c0_22] : memref<8x36xbf16, #tpu.memory_space<vmem>>, vector<8x36xbf16>
    %c0_23 = arith.constant 0 : index
    %c0_24 = arith.constant 0 : index
    %40 = vector.load %arg6[%c0_23, %c0_24] : memref<4x36xbf16, #tpu.memory_space<vmem>>, vector<4x36xbf16>
    %c9_i32 = arith.constant 9 : i32
    %41 = tpu.dynamic_rotate %35 by %c9_i32 dim 1 : vector<4x128xf32>, i32 -> vector<4x128xf32>
    %cst = arith.constant 0.000000e+00 : f32
    %42 = vector.shape_cast %10 : vector<1x128xi1> to vector<1x128xi1>
    %43 = vector.broadcast %42 : vector<1x128xi1> to vector<4x128xi1>
    %44 = vector.broadcast %cst : f32 to vector<4x128xf32>
    %45 = arith.select %43, %41, %44 : vector<4x128xi1>, vector<4x128xf32>
    %c8_i32 = arith.constant 8 : i32
    %46 = tpu.dynamic_rotate %35 by %c8_i32 dim 1 : vector<4x128xf32>, i32 -> vector<4x128xf32>
    %cst_25 = arith.constant 0.000000e+00 : f32
    %47 = vector.shape_cast %12 : vector<1x128xi1> to vector<1x128xi1>
    %48 = vector.broadcast %47 : vector<1x128xi1> to vector<4x128xi1>
    %49 = vector.broadcast %cst_25 : f32 to vector<4x128xf32>
    %50 = arith.select %48, %46, %49 : vector<4x128xi1>, vector<4x128xf32>
    %c7_i32 = arith.constant 7 : i32
    %51 = tpu.dynamic_rotate %35 by %c7_i32 dim 1 : vector<4x128xf32>, i32 -> vector<4x128xf32>
    %cst_26 = arith.constant 0.000000e+00 : f32
    %52 = vector.shape_cast %17 : vector<1x128xi1> to vector<1x128xi1>
    %53 = vector.broadcast %52 : vector<1x128xi1> to vector<4x128xi1>
    %54 = vector.broadcast %cst_26 : f32 to vector<4x128xf32>
    %55 = arith.select %53, %51, %54 : vector<4x128xi1>, vector<4x128xf32>
    %c1_i32_27 = arith.constant 1 : i32
    %56 = tpu.dynamic_rotate %35 by %c1_i32_27 dim 1 : vector<4x128xf32>, i32 -> vector<4x128xf32>
    %cst_28 = arith.constant 0.000000e+00 : f32
    %57 = vector.shape_cast %19 : vector<1x128xi1> to vector<1x128xi1>
    %58 = vector.broadcast %57 : vector<1x128xi1> to vector<4x128xi1>
    %59 = vector.broadcast %cst_28 : f32 to vector<4x128xf32>
    %60 = arith.select %58, %56, %59 : vector<4x128xi1>, vector<4x128xf32>
    %c127_i32 = arith.constant 127 : i32
    %61 = tpu.dynamic_rotate %35 by %c127_i32 dim 1 : vector<4x128xf32>, i32 -> vector<4x128xf32>
    %cst_29 = arith.constant 0.000000e+00 : f32
    %62 = vector.shape_cast %21 : vector<1x128xi1> to vector<1x128xi1>
    %63 = vector.broadcast %62 : vector<1x128xi1> to vector<4x128xi1>
    %64 = vector.broadcast %cst_29 : f32 to vector<4x128xf32>
    %65 = arith.select %63, %61, %64 : vector<4x128xi1>, vector<4x128xf32>
    %c121_i32 = arith.constant 121 : i32
    %66 = tpu.dynamic_rotate %35 by %c121_i32 dim 1 : vector<4x128xf32>, i32 -> vector<4x128xf32>
    %cst_30 = arith.constant 0.000000e+00 : f32
    %67 = vector.shape_cast %26 : vector<1x128xi1> to vector<1x128xi1>
    %68 = vector.broadcast %67 : vector<1x128xi1> to vector<4x128xi1>
    %69 = vector.broadcast %cst_30 : f32 to vector<4x128xf32>
    %70 = arith.select %68, %66, %69 : vector<4x128xi1>, vector<4x128xf32>
    %c120_i32 = arith.constant 120 : i32
    %71 = tpu.dynamic_rotate %35 by %c120_i32 dim 1 : vector<4x128xf32>, i32 -> vector<4x128xf32>
    %cst_31 = arith.constant 0.000000e+00 : f32
    %72 = vector.shape_cast %28 : vector<1x128xi1> to vector<1x128xi1>
    %73 = vector.broadcast %72 : vector<1x128xi1> to vector<4x128xi1>
    %74 = vector.broadcast %cst_31 : f32 to vector<4x128xf32>
    %75 = arith.select %73, %71, %74 : vector<4x128xi1>, vector<4x128xf32>
    %c119_i32 = arith.constant 119 : i32
    %76 = tpu.dynamic_rotate %35 by %c119_i32 dim 1 : vector<4x128xf32>, i32 -> vector<4x128xf32>
    %cst_32 = arith.constant 0.000000e+00 : f32
    %77 = vector.shape_cast %33 : vector<1x128xi1> to vector<1x128xi1>
    %78 = vector.broadcast %77 : vector<1x128xi1> to vector<4x128xi1>
    %79 = vector.broadcast %cst_32 : f32 to vector<4x128xf32>
    %80 = arith.select %78, %76, %79 : vector<4x128xi1>, vector<4x128xf32>
    %81 = tpu.concatenate %45, %50, %55, %60, %35, %65, %70, %75, %80 in 0 : vector<4x128xf32>, vector<4x128xf32>, vector<4x128xf32>, vector<4x128xf32>, vector<4x128xf32>, vector<4x128xf32>, vector<4x128xf32>, vector<4x128xf32>, vector<4x128xf32> -> vector<36x128xf32>
    %82 = arith.truncf %81 : vector<36x128xf32> to vector<36x128xbf16>
    %c9_i32_33 = arith.constant 9 : i32
    %83 = tpu.dynamic_rotate %36 by %c9_i32_33 dim 1 : vector<4x128xf32>, i32 -> vector<4x128xf32>
    %cst_34 = arith.constant 0.000000e+00 : f32
    %84 = vector.shape_cast %10 : vector<1x128xi1> to vector<1x128xi1>
    %85 = vector.broadcast %84 : vector<1x128xi1> to vector<4x128xi1>
    %86 = vector.broadcast %cst_34 : f32 to vector<4x128xf32>
    %87 = arith.select %85, %83, %86 : vector<4x128xi1>, vector<4x128xf32>
    %c8_i32_35 = arith.constant 8 : i32
    %88 = tpu.dynamic_rotate %36 by %c8_i32_35 dim 1 : vector<4x128xf32>, i32 -> vector<4x128xf32>
    %cst_36 = arith.constant 0.000000e+00 : f32
    %89 = vector.shape_cast %12 : vector<1x128xi1> to vector<1x128xi1>
    %90 = vector.broadcast %89 : vector<1x128xi1> to vector<4x128xi1>
    %91 = vector.broadcast %cst_36 : f32 to vector<4x128xf32>
    %92 = arith.select %90, %88, %91 : vector<4x128xi1>, vector<4x128xf32>
    %c7_i32_37 = arith.constant 7 : i32
    %93 = tpu.dynamic_rotate %36 by %c7_i32_37 dim 1 : vector<4x128xf32>, i32 -> vector<4x128xf32>
    %cst_38 = arith.constant 0.000000e+00 : f32
    %94 = vector.shape_cast %17 : vector<1x128xi1> to vector<1x128xi1>
    %95 = vector.broadcast %94 : vector<1x128xi1> to vector<4x128xi1>
    %96 = vector.broadcast %cst_38 : f32 to vector<4x128xf32>
    %97 = arith.select %95, %93, %96 : vector<4x128xi1>, vector<4x128xf32>
    %c1_i32_39 = arith.constant 1 : i32
    %98 = tpu.dynamic_rotate %36 by %c1_i32_39 dim 1 : vector<4x128xf32>, i32 -> vector<4x128xf32>
    %cst_40 = arith.constant 0.000000e+00 : f32
    %99 = vector.shape_cast %19 : vector<1x128xi1> to vector<1x128xi1>
    %100 = vector.broadcast %99 : vector<1x128xi1> to vector<4x128xi1>
    %101 = vector.broadcast %cst_40 : f32 to vector<4x128xf32>
    %102 = arith.select %100, %98, %101 : vector<4x128xi1>, vector<4x128xf32>
    %c127_i32_41 = arith.constant 127 : i32
    %103 = tpu.dynamic_rotate %36 by %c127_i32_41 dim 1 : vector<4x128xf32>, i32 -> vector<4x128xf32>
    %cst_42 = arith.constant 0.000000e+00 : f32
    %104 = vector.shape_cast %21 : vector<1x128xi1> to vector<1x128xi1>
    %105 = vector.broadcast %104 : vector<1x128xi1> to vector<4x128xi1>
    %106 = vector.broadcast %cst_42 : f32 to vector<4x128xf32>
    %107 = arith.select %105, %103, %106 : vector<4x128xi1>, vector<4x128xf32>
    %c121_i32_43 = arith.constant 121 : i32
    %108 = tpu.dynamic_rotate %36 by %c121_i32_43 dim 1 : vector<4x128xf32>, i32 -> vector<4x128xf32>
    %cst_44 = arith.constant 0.000000e+00 : f32
    %109 = vector.shape_cast %26 : vector<1x128xi1> to vector<1x128xi1>
    %110 = vector.broadcast %109 : vector<1x128xi1> to vector<4x128xi1>
    %111 = vector.broadcast %cst_44 : f32 to vector<4x128xf32>
    %112 = arith.select %110, %108, %111 : vector<4x128xi1>, vector<4x128xf32>
    %c120_i32_45 = arith.constant 120 : i32
    %113 = tpu.dynamic_rotate %36 by %c120_i32_45 dim 1 : vector<4x128xf32>, i32 -> vector<4x128xf32>
    %cst_46 = arith.constant 0.000000e+00 : f32
    %114 = vector.shape_cast %28 : vector<1x128xi1> to vector<1x128xi1>
    %115 = vector.broadcast %114 : vector<1x128xi1> to vector<4x128xi1>
    %116 = vector.broadcast %cst_46 : f32 to vector<4x128xf32>
    %117 = arith.select %115, %113, %116 : vector<4x128xi1>, vector<4x128xf32>
    %c119_i32_47 = arith.constant 119 : i32
    %118 = tpu.dynamic_rotate %36 by %c119_i32_47 dim 1 : vector<4x128xf32>, i32 -> vector<4x128xf32>
    %cst_48 = arith.constant 0.000000e+00 : f32
    %119 = vector.shape_cast %33 : vector<1x128xi1> to vector<1x128xi1>
    %120 = vector.broadcast %119 : vector<1x128xi1> to vector<4x128xi1>
    %121 = vector.broadcast %cst_48 : f32 to vector<4x128xf32>
    %122 = arith.select %120, %118, %121 : vector<4x128xi1>, vector<4x128xf32>
    %123 = tpu.concatenate %87, %92, %97, %102, %36, %107, %112, %117, %122 in 0 : vector<4x128xf32>, vector<4x128xf32>, vector<4x128xf32>, vector<4x128xf32>, vector<4x128xf32>, vector<4x128xf32>, vector<4x128xf32>, vector<4x128xf32>, vector<4x128xf32> -> vector<36x128xf32>
    %124 = arith.truncf %123 : vector<36x128xf32> to vector<36x128xbf16>
    %cst_49 = arith.constant dense<0.000000e+00> : vector<12x128xf32>
    %125 = tpu.matmul %37, %82, %cst_49 {dimension_numbers = #tpu.dot_dimension_numbers<[1], [0], [0], [1], [0, 0, 1, 1], [], []>} : vector<12x36xbf16>, vector<36x128xbf16>, vector<12x128xf32> -> vector<12x128xf32>
    %126 = vector.broadcast %38 : vector<12x1xf32> to vector<12x128xf32>
    %127 = arith.addf %125, %126 : vector<12x128xf32>
    %cst_50 = arith.constant dense<0.000000e+00> : vector<8x128xf32>
    %128 = tpu.matmul %39, %124, %cst_50 {dimension_numbers = #tpu.dot_dimension_numbers<[1], [0], [0], [1], [0, 0, 1, 1], [], []>} : vector<8x36xbf16>, vector<36x128xbf16>, vector<8x128xf32> -> vector<8x128xf32>
    %129 = vector.extract_strided_slice %127 {offsets = [0, 0], sizes = [8, 128], strides = [1, 1]} : vector<12x128xf32> to vector<8x128xf32>
    %130 = arith.addf %128, %129 : vector<8x128xf32>
    %131 = arith.negf %130 : vector<8x128xf32>
    %132 = math.exp %131 : vector<8x128xf32>
    %cst_51 = arith.constant 1.000000e+00 : f32
    %133 = vector.broadcast %cst_51 : f32 to vector<8x128xf32>
    %134 = arith.addf %133, %132 : vector<8x128xf32>
    %135 = arith.divf %133, %134 : vector<8x128xf32>
    %136 = vector.extract_strided_slice %135 {offsets = [0, 0], sizes = [4, 128], strides = [1, 1]} : vector<8x128xf32> to vector<4x128xf32>
    %137 = vector.extract_strided_slice %135 {offsets = [4, 0], sizes = [4, 128], strides = [1, 1]} : vector<8x128xf32> to vector<4x128xf32>
    %138 = arith.mulf %136, %36 : vector<4x128xf32>
    %c9_i32_52 = arith.constant 9 : i32
    %139 = tpu.dynamic_rotate %138 by %c9_i32_52 dim 1 : vector<4x128xf32>, i32 -> vector<4x128xf32>
    %cst_53 = arith.constant 0.000000e+00 : f32
    %140 = vector.shape_cast %10 : vector<1x128xi1> to vector<1x128xi1>
    %141 = vector.broadcast %140 : vector<1x128xi1> to vector<4x128xi1>
    %142 = vector.broadcast %cst_53 : f32 to vector<4x128xf32>
    %143 = arith.select %141, %139, %142 : vector<4x128xi1>, vector<4x128xf32>
    %c8_i32_54 = arith.constant 8 : i32
    %144 = tpu.dynamic_rotate %138 by %c8_i32_54 dim 1 : vector<4x128xf32>, i32 -> vector<4x128xf32>
    %cst_55 = arith.constant 0.000000e+00 : f32
    %145 = vector.shape_cast %12 : vector<1x128xi1> to vector<1x128xi1>
    %146 = vector.broadcast %145 : vector<1x128xi1> to vector<4x128xi1>
    %147 = vector.broadcast %cst_55 : f32 to vector<4x128xf32>
    %148 = arith.select %146, %144, %147 : vector<4x128xi1>, vector<4x128xf32>
    %c7_i32_56 = arith.constant 7 : i32
    %149 = tpu.dynamic_rotate %138 by %c7_i32_56 dim 1 : vector<4x128xf32>, i32 -> vector<4x128xf32>
    %cst_57 = arith.constant 0.000000e+00 : f32
    %150 = vector.shape_cast %17 : vector<1x128xi1> to vector<1x128xi1>
    %151 = vector.broadcast %150 : vector<1x128xi1> to vector<4x128xi1>
    %152 = vector.broadcast %cst_57 : f32 to vector<4x128xf32>
    %153 = arith.select %151, %149, %152 : vector<4x128xi1>, vector<4x128xf32>
    %c1_i32_58 = arith.constant 1 : i32
    %154 = tpu.dynamic_rotate %138 by %c1_i32_58 dim 1 : vector<4x128xf32>, i32 -> vector<4x128xf32>
    %cst_59 = arith.constant 0.000000e+00 : f32
    %155 = vector.shape_cast %19 : vector<1x128xi1> to vector<1x128xi1>
    %156 = vector.broadcast %155 : vector<1x128xi1> to vector<4x128xi1>
    %157 = vector.broadcast %cst_59 : f32 to vector<4x128xf32>
    %158 = arith.select %156, %154, %157 : vector<4x128xi1>, vector<4x128xf32>
    %c127_i32_60 = arith.constant 127 : i32
    %159 = tpu.dynamic_rotate %138 by %c127_i32_60 dim 1 : vector<4x128xf32>, i32 -> vector<4x128xf32>
    %cst_61 = arith.constant 0.000000e+00 : f32
    %160 = vector.shape_cast %21 : vector<1x128xi1> to vector<1x128xi1>
    %161 = vector.broadcast %160 : vector<1x128xi1> to vector<4x128xi1>
    %162 = vector.broadcast %cst_61 : f32 to vector<4x128xf32>
    %163 = arith.select %161, %159, %162 : vector<4x128xi1>, vector<4x128xf32>
    %c121_i32_62 = arith.constant 121 : i32
    %164 = tpu.dynamic_rotate %138 by %c121_i32_62 dim 1 : vector<4x128xf32>, i32 -> vector<4x128xf32>
    %cst_63 = arith.constant 0.000000e+00 : f32
    %165 = vector.shape_cast %26 : vector<1x128xi1> to vector<1x128xi1>
    %166 = vector.broadcast %165 : vector<1x128xi1> to vector<4x128xi1>
    %167 = vector.broadcast %cst_63 : f32 to vector<4x128xf32>
    %168 = arith.select %166, %164, %167 : vector<4x128xi1>, vector<4x128xf32>
    %c120_i32_64 = arith.constant 120 : i32
    %169 = tpu.dynamic_rotate %138 by %c120_i32_64 dim 1 : vector<4x128xf32>, i32 -> vector<4x128xf32>
    %cst_65 = arith.constant 0.000000e+00 : f32
    %170 = vector.shape_cast %28 : vector<1x128xi1> to vector<1x128xi1>
    %171 = vector.broadcast %170 : vector<1x128xi1> to vector<4x128xi1>
    %172 = vector.broadcast %cst_65 : f32 to vector<4x128xf32>
    %173 = arith.select %171, %169, %172 : vector<4x128xi1>, vector<4x128xf32>
    %c119_i32_66 = arith.constant 119 : i32
    %174 = tpu.dynamic_rotate %138 by %c119_i32_66 dim 1 : vector<4x128xf32>, i32 -> vector<4x128xf32>
    %cst_67 = arith.constant 0.000000e+00 : f32
    %175 = vector.shape_cast %33 : vector<1x128xi1> to vector<1x128xi1>
    %176 = vector.broadcast %175 : vector<1x128xi1> to vector<4x128xi1>
    %177 = vector.broadcast %cst_67 : f32 to vector<4x128xf32>
    %178 = arith.select %176, %174, %177 : vector<4x128xi1>, vector<4x128xf32>
    %179 = tpu.concatenate %143, %148, %153, %158, %138, %163, %168, %173, %178 in 0 : vector<4x128xf32>, vector<4x128xf32>, vector<4x128xf32>, vector<4x128xf32>, vector<4x128xf32>, vector<4x128xf32>, vector<4x128xf32>, vector<4x128xf32>, vector<4x128xf32> -> vector<36x128xf32>
    %180 = arith.truncf %179 : vector<36x128xf32> to vector<36x128xbf16>
    %cst_68 = arith.constant dense<0.000000e+00> : vector<4x128xf32>
    %181 = tpu.matmul %40, %180, %cst_68 {dimension_numbers = #tpu.dot_dimension_numbers<[1], [0], [0], [1], [0, 0, 1, 1], [], []>} : vector<4x36xbf16>, vector<36x128xbf16>, vector<4x128xf32> -> vector<4x128xf32>
    %182 = vector.extract_strided_slice %127 {offsets = [8, 0], sizes = [4, 128], strides = [1, 1]} : vector<12x128xf32> to vector<4x128xf32>
    %183 = arith.addf %181, %182 : vector<4x128xf32>
    %184 = math.tanh %183 : vector<4x128xf32>
    %185 = arith.subf %184, %36 : vector<4x128xf32>
    %186 = arith.mulf %137, %185 : vector<4x128xf32>
    %187 = arith.addf %36, %186 : vector<4x128xf32>
    %c0_69 = arith.constant 0 : index
    %c0_70 = arith.constant 0 : index
    %188 = vector.load %arg12[%c0_69, %c0_70] : memref<4x128xf32, #tpu.memory_space<vmem>>, vector<4x128xf32>
    tpu.vector_store %arg12[%c0_69, %c0_70], %187 {strides = array<i32>} : memref<4x128xf32, #tpu.memory_space<vmem>>, vector<4x128xf32>,
    %c0_71 = arith.constant 0 : index
    %c0_72 = arith.constant 0 : index
    %189 = vector.load %arg13[%c0_71, %c0_72] : memref<8x128xf32, #tpu.memory_space<vmem>>, vector<8x128xf32>
    %c0_73 = arith.constant 0 : index
    %c0_74 = arith.constant 0 : index
    %190 = vector.load %arg7[%c0_73, %c0_74] : memref<24x36xbf16, #tpu.memory_space<vmem>>, vector<24x36xbf16>
    %c0_75 = arith.constant 0 : index
    %c0_76 = arith.constant 0 : index
    %191 = vector.load %arg8[%c0_75, %c0_76] : memref<24x1xf32, #tpu.memory_space<vmem>>, vector<24x1xf32>
    %c0_77 = arith.constant 0 : index
    %c0_78 = arith.constant 0 : index
    %192 = vector.load %arg9[%c0_77, %c0_78] : memref<16x72xbf16, #tpu.memory_space<vmem>>, vector<16x72xbf16>
    %c0_79 = arith.constant 0 : index
    %c0_80 = arith.constant 0 : index
    %193 = vector.load %arg10[%c0_79, %c0_80] : memref<8x72xbf16, #tpu.memory_space<vmem>>, vector<8x72xbf16>
    %c9_i32_81 = arith.constant 9 : i32
    %194 = tpu.dynamic_rotate %187 by %c9_i32_81 dim 1 : vector<4x128xf32>, i32 -> vector<4x128xf32>
    %cst_82 = arith.constant 0.000000e+00 : f32
    %195 = vector.shape_cast %10 : vector<1x128xi1> to vector<1x128xi1>
    %196 = vector.broadcast %195 : vector<1x128xi1> to vector<4x128xi1>
    %197 = vector.broadcast %cst_82 : f32 to vector<4x128xf32>
    %198 = arith.select %196, %194, %197 : vector<4x128xi1>, vector<4x128xf32>
    %c8_i32_83 = arith.constant 8 : i32
    %199 = tpu.dynamic_rotate %187 by %c8_i32_83 dim 1 : vector<4x128xf32>, i32 -> vector<4x128xf32>
    %cst_84 = arith.constant 0.000000e+00 : f32
    %200 = vector.shape_cast %12 : vector<1x128xi1> to vector<1x128xi1>
    %201 = vector.broadcast %200 : vector<1x128xi1> to vector<4x128xi1>
    %202 = vector.broadcast %cst_84 : f32 to vector<4x128xf32>
    %203 = arith.select %201, %199, %202 : vector<4x128xi1>, vector<4x128xf32>
    %c7_i32_85 = arith.constant 7 : i32
    %204 = tpu.dynamic_rotate %187 by %c7_i32_85 dim 1 : vector<4x128xf32>, i32 -> vector<4x128xf32>
    %cst_86 = arith.constant 0.000000e+00 : f32
    %205 = vector.shape_cast %17 : vector<1x128xi1> to vector<1x128xi1>
    %206 = vector.broadcast %205 : vector<1x128xi1> to vector<4x128xi1>
    %207 = vector.broadcast %cst_86 : f32 to vector<4x128xf32>
    %208 = arith.select %206, %204, %207 : vector<4x128xi1>, vector<4x128xf32>
    %c1_i32_87 = arith.constant 1 : i32
    %209 = tpu.dynamic_rotate %187 by %c1_i32_87 dim 1 : vector<4x128xf32>, i32 -> vector<4x128xf32>
    %cst_88 = arith.constant 0.000000e+00 : f32
    %210 = vector.shape_cast %19 : vector<1x128xi1> to vector<1x128xi1>
    %211 = vector.broadcast %210 : vector<1x128xi1> to vector<4x128xi1>
    %212 = vector.broadcast %cst_88 : f32 to vector<4x128xf32>
    %213 = arith.select %211, %209, %212 : vector<4x128xi1>, vector<4x128xf32>
    %c127_i32_89 = arith.constant 127 : i32
    %214 = tpu.dynamic_rotate %187 by %c127_i32_89 dim 1 : vector<4x128xf32>, i32 -> vector<4x128xf32>
    %cst_90 = arith.constant 0.000000e+00 : f32
    %215 = vector.shape_cast %21 : vector<1x128xi1> to vector<1x128xi1>
    %216 = vector.broadcast %215 : vector<1x128xi1> to vector<4x128xi1>
    %217 = vector.broadcast %cst_90 : f32 to vector<4x128xf32>
    %218 = arith.select %216, %214, %217 : vector<4x128xi1>, vector<4x128xf32>
    %c121_i32_91 = arith.constant 121 : i32
    %219 = tpu.dynamic_rotate %187 by %c121_i32_91 dim 1 : vector<4x128xf32>, i32 -> vector<4x128xf32>
    %cst_92 = arith.constant 0.000000e+00 : f32
    %220 = vector.shape_cast %26 : vector<1x128xi1> to vector<1x128xi1>
    %221 = vector.broadcast %220 : vector<1x128xi1> to vector<4x128xi1>
    %222 = vector.broadcast %cst_92 : f32 to vector<4x128xf32>
    %223 = arith.select %221, %219, %222 : vector<4x128xi1>, vector<4x128xf32>
    %c120_i32_93 = arith.constant 120 : i32
    %224 = tpu.dynamic_rotate %187 by %c120_i32_93 dim 1 : vector<4x128xf32>, i32 -> vector<4x128xf32>
    %cst_94 = arith.constant 0.000000e+00 : f32
    %225 = vector.shape_cast %28 : vector<1x128xi1> to vector<1x128xi1>
    %226 = vector.broadcast %225 : vector<1x128xi1> to vector<4x128xi1>
    %227 = vector.broadcast %cst_94 : f32 to vector<4x128xf32>
    %228 = arith.select %226, %224, %227 : vector<4x128xi1>, vector<4x128xf32>
    %c119_i32_95 = arith.constant 119 : i32
    %229 = tpu.dynamic_rotate %187 by %c119_i32_95 dim 1 : vector<4x128xf32>, i32 -> vector<4x128xf32>
    %cst_96 = arith.constant 0.000000e+00 : f32
    %230 = vector.shape_cast %33 : vector<1x128xi1> to vector<1x128xi1>
    %231 = vector.broadcast %230 : vector<1x128xi1> to vector<4x128xi1>
    %232 = vector.broadcast %cst_96 : f32 to vector<4x128xf32>
    %233 = arith.select %231, %229, %232 : vector<4x128xi1>, vector<4x128xf32>
    %234 = tpu.concatenate %198, %203, %208, %213, %187, %218, %223, %228, %233 in 0 : vector<4x128xf32>, vector<4x128xf32>, vector<4x128xf32>, vector<4x128xf32>, vector<4x128xf32>, vector<4x128xf32>, vector<4x128xf32>, vector<4x128xf32>, vector<4x128xf32> -> vector<36x128xf32>
    %235 = arith.truncf %234 : vector<36x128xf32> to vector<36x128xbf16>
    %c9_i32_97 = arith.constant 9 : i32
    %236 = tpu.dynamic_rotate %189 by %c9_i32_97 dim 1 : vector<8x128xf32>, i32 -> vector<8x128xf32>
    %cst_98 = arith.constant 0.000000e+00 : f32
    %237 = vector.shape_cast %10 : vector<1x128xi1> to vector<1x128xi1>
    %238 = vector.broadcast %237 : vector<1x128xi1> to vector<8x128xi1>
    %239 = vector.broadcast %cst_98 : f32 to vector<8x128xf32>
    %240 = arith.select %238, %236, %239 : vector<8x128xi1>, vector<8x128xf32>
    %c8_i32_99 = arith.constant 8 : i32
    %241 = tpu.dynamic_rotate %189 by %c8_i32_99 dim 1 : vector<8x128xf32>, i32 -> vector<8x128xf32>
    %cst_100 = arith.constant 0.000000e+00 : f32
    %242 = vector.shape_cast %12 : vector<1x128xi1> to vector<1x128xi1>
    %243 = vector.broadcast %242 : vector<1x128xi1> to vector<8x128xi1>
    %244 = vector.broadcast %cst_100 : f32 to vector<8x128xf32>
    %245 = arith.select %243, %241, %244 : vector<8x128xi1>, vector<8x128xf32>
    %c7_i32_101 = arith.constant 7 : i32
    %246 = tpu.dynamic_rotate %189 by %c7_i32_101 dim 1 : vector<8x128xf32>, i32 -> vector<8x128xf32>
    %cst_102 = arith.constant 0.000000e+00 : f32
    %247 = vector.shape_cast %17 : vector<1x128xi1> to vector<1x128xi1>
    %248 = vector.broadcast %247 : vector<1x128xi1> to vector<8x128xi1>
    %249 = vector.broadcast %cst_102 : f32 to vector<8x128xf32>
    %250 = arith.select %248, %246, %249 : vector<8x128xi1>, vector<8x128xf32>
    %c1_i32_103 = arith.constant 1 : i32
    %251 = tpu.dynamic_rotate %189 by %c1_i32_103 dim 1 : vector<8x128xf32>, i32 -> vector<8x128xf32>
    %cst_104 = arith.constant 0.000000e+00 : f32
    %252 = vector.shape_cast %19 : vector<1x128xi1> to vector<1x128xi1>
    %253 = vector.broadcast %252 : vector<1x128xi1> to vector<8x128xi1>
    %254 = vector.broadcast %cst_104 : f32 to vector<8x128xf32>
    %255 = arith.select %253, %251, %254 : vector<8x128xi1>, vector<8x128xf32>
    %c127_i32_105 = arith.constant 127 : i32
    %256 = tpu.dynamic_rotate %189 by %c127_i32_105 dim 1 : vector<8x128xf32>, i32 -> vector<8x128xf32>
    %cst_106 = arith.constant 0.000000e+00 : f32
    %257 = vector.shape_cast %21 : vector<1x128xi1> to vector<1x128xi1>
    %258 = vector.broadcast %257 : vector<1x128xi1> to vector<8x128xi1>
    %259 = vector.broadcast %cst_106 : f32 to vector<8x128xf32>
    %260 = arith.select %258, %256, %259 : vector<8x128xi1>, vector<8x128xf32>
    %c121_i32_107 = arith.constant 121 : i32
    %261 = tpu.dynamic_rotate %189 by %c121_i32_107 dim 1 : vector<8x128xf32>, i32 -> vector<8x128xf32>
    %cst_108 = arith.constant 0.000000e+00 : f32
    %262 = vector.shape_cast %26 : vector<1x128xi1> to vector<1x128xi1>
    %263 = vector.broadcast %262 : vector<1x128xi1> to vector<8x128xi1>
    %264 = vector.broadcast %cst_108 : f32 to vector<8x128xf32>
    %265 = arith.select %263, %261, %264 : vector<8x128xi1>, vector<8x128xf32>
    %c120_i32_109 = arith.constant 120 : i32
    %266 = tpu.dynamic_rotate %189 by %c120_i32_109 dim 1 : vector<8x128xf32>, i32 -> vector<8x128xf32>
    %cst_110 = arith.constant 0.000000e+00 : f32
    %267 = vector.shape_cast %28 : vector<1x128xi1> to vector<1x128xi1>
    %268 = vector.broadcast %267 : vector<1x128xi1> to vector<8x128xi1>
    %269 = vector.broadcast %cst_110 : f32 to vector<8x128xf32>
    %270 = arith.select %268, %266, %269 : vector<8x128xi1>, vector<8x128xf32>
    %c119_i32_111 = arith.constant 119 : i32
    %271 = tpu.dynamic_rotate %189 by %c119_i32_111 dim 1 : vector<8x128xf32>, i32 -> vector<8x128xf32>
    %cst_112 = arith.constant 0.000000e+00 : f32
    %272 = vector.shape_cast %33 : vector<1x128xi1> to vector<1x128xi1>
    %273 = vector.broadcast %272 : vector<1x128xi1> to vector<8x128xi1>
    %274 = vector.broadcast %cst_112 : f32 to vector<8x128xf32>
    %275 = arith.select %273, %271, %274 : vector<8x128xi1>, vector<8x128xf32>
    %276 = tpu.concatenate %240, %245, %250, %255, %189, %260, %265, %270, %275 in 0 : vector<8x128xf32>, vector<8x128xf32>, vector<8x128xf32>, vector<8x128xf32>, vector<8x128xf32>, vector<8x128xf32>, vector<8x128xf32>, vector<8x128xf32>, vector<8x128xf32> -> vector<72x128xf32>
    %277 = arith.truncf %276 : vector<72x128xf32> to vector<72x128xbf16>
    %cst_113 = arith.constant dense<0.000000e+00> : vector<24x128xf32>
    %278 = tpu.matmul %190, %235, %cst_113 {dimension_numbers = #tpu.dot_dimension_numbers<[1], [0], [0], [1], [0, 0, 1, 1], [], []>} : vector<24x36xbf16>, vector<36x128xbf16>, vector<24x128xf32> -> vector<24x128xf32>
    %279 = vector.broadcast %191 : vector<24x1xf32> to vector<24x128xf32>
    %280 = arith.addf %278, %279 : vector<24x128xf32>
    %cst_114 = arith.constant dense<0.000000e+00> : vector<16x128xf32>
    %281 = tpu.matmul %192, %277, %cst_114 {dimension_numbers = #tpu.dot_dimension_numbers<[1], [0], [0], [1], [0, 0, 1, 1], [], []>} : vector<16x72xbf16>, vector<72x128xbf16>, vector<16x128xf32> -> vector<16x128xf32>
    %282 = vector.extract_strided_slice %280 {offsets = [0, 0], sizes = [16, 128], strides = [1, 1]} : vector<24x128xf32> to vector<16x128xf32>
    %283 = arith.addf %281, %282 : vector<16x128xf32>
    %284 = arith.negf %283 : vector<16x128xf32>
    %285 = math.exp %284 : vector<16x128xf32>
    %cst_115 = arith.constant 1.000000e+00 : f32
    %286 = vector.broadcast %cst_115 : f32 to vector<16x128xf32>
    %287 = arith.addf %286, %285 : vector<16x128xf32>
    %288 = arith.divf %286, %287 : vector<16x128xf32>
    %289 = vector.extract_strided_slice %288 {offsets = [0, 0], sizes = [8, 128], strides = [1, 1]} : vector<16x128xf32> to vector<8x128xf32>
    %290 = vector.extract_strided_slice %288 {offsets = [8, 0], sizes = [8, 128], strides = [1, 1]} : vector<16x128xf32> to vector<8x128xf32>
    %291 = arith.mulf %289, %189 : vector<8x128xf32>
    %c9_i32_116 = arith.constant 9 : i32
    %292 = tpu.dynamic_rotate %291 by %c9_i32_116 dim 1 : vector<8x128xf32>, i32 -> vector<8x128xf32>
    %cst_117 = arith.constant 0.000000e+00 : f32
    %293 = vector.shape_cast %10 : vector<1x128xi1> to vector<1x128xi1>
    %294 = vector.broadcast %293 : vector<1x128xi1> to vector<8x128xi1>
    %295 = vector.broadcast %cst_117 : f32 to vector<8x128xf32>
    %296 = arith.select %294, %292, %295 : vector<8x128xi1>, vector<8x128xf32>
    %c8_i32_118 = arith.constant 8 : i32
    %297 = tpu.dynamic_rotate %291 by %c8_i32_118 dim 1 : vector<8x128xf32>, i32 -> vector<8x128xf32>
    %cst_119 = arith.constant 0.000000e+00 : f32
    %298 = vector.shape_cast %12 : vector<1x128xi1> to vector<1x128xi1>
    %299 = vector.broadcast %298 : vector<1x128xi1> to vector<8x128xi1>
    %300 = vector.broadcast %cst_119 : f32 to vector<8x128xf32>
    %301 = arith.select %299, %297, %300 : vector<8x128xi1>, vector<8x128xf32>
    %c7_i32_120 = arith.constant 7 : i32
    %302 = tpu.dynamic_rotate %291 by %c7_i32_120 dim 1 : vector<8x128xf32>, i32 -> vector<8x128xf32>
    %cst_121 = arith.constant 0.000000e+00 : f32
    %303 = vector.shape_cast %17 : vector<1x128xi1> to vector<1x128xi1>
    %304 = vector.broadcast %303 : vector<1x128xi1> to vector<8x128xi1>
    %305 = vector.broadcast %cst_121 : f32 to vector<8x128xf32>
    %306 = arith.select %304, %302, %305 : vector<8x128xi1>, vector<8x128xf32>
    %c1_i32_122 = arith.constant 1 : i32
    %307 = tpu.dynamic_rotate %291 by %c1_i32_122 dim 1 : vector<8x128xf32>, i32 -> vector<8x128xf32>
    %cst_123 = arith.constant 0.000000e+00 : f32
    %308 = vector.shape_cast %19 : vector<1x128xi1> to vector<1x128xi1>
    %309 = vector.broadcast %308 : vector<1x128xi1> to vector<8x128xi1>
    %310 = vector.broadcast %cst_123 : f32 to vector<8x128xf32>
    %311 = arith.select %309, %307, %310 : vector<8x128xi1>, vector<8x128xf32>
    %c127_i32_124 = arith.constant 127 : i32
    %312 = tpu.dynamic_rotate %291 by %c127_i32_124 dim 1 : vector<8x128xf32>, i32 -> vector<8x128xf32>
    %cst_125 = arith.constant 0.000000e+00 : f32
    %313 = vector.shape_cast %21 : vector<1x128xi1> to vector<1x128xi1>
    %314 = vector.broadcast %313 : vector<1x128xi1> to vector<8x128xi1>
    %315 = vector.broadcast %cst_125 : f32 to vector<8x128xf32>
    %316 = arith.select %314, %312, %315 : vector<8x128xi1>, vector<8x128xf32>
    %c121_i32_126 = arith.constant 121 : i32
    %317 = tpu.dynamic_rotate %291 by %c121_i32_126 dim 1 : vector<8x128xf32>, i32 -> vector<8x128xf32>
    %cst_127 = arith.constant 0.000000e+00 : f32
    %318 = vector.shape_cast %26 : vector<1x128xi1> to vector<1x128xi1>
    %319 = vector.broadcast %318 : vector<1x128xi1> to vector<8x128xi1>
    %320 = vector.broadcast %cst_127 : f32 to vector<8x128xf32>
    %321 = arith.select %319, %317, %320 : vector<8x128xi1>, vector<8x128xf32>
    %c120_i32_128 = arith.constant 120 : i32
    %322 = tpu.dynamic_rotate %291 by %c120_i32_128 dim 1 : vector<8x128xf32>, i32 -> vector<8x128xf32>
    %cst_129 = arith.constant 0.000000e+00 : f32
    %323 = vector.shape_cast %28 : vector<1x128xi1> to vector<1x128xi1>
    %324 = vector.broadcast %323 : vector<1x128xi1> to vector<8x128xi1>
    %325 = vector.broadcast %cst_129 : f32 to vector<8x128xf32>
    %326 = arith.select %324, %322, %325 : vector<8x128xi1>, vector<8x128xf32>
    %c119_i32_130 = arith.constant 119 : i32
    %327 = tpu.dynamic_rotate %291 by %c119_i32_130 dim 1 : vector<8x128xf32>, i32 -> vector<8x128xf32>
    %cst_131 = arith.constant 0.000000e+00 : f32
    %328 = vector.shape_cast %33 : vector<1x128xi1> to vector<1x128xi1>
    %329 = vector.broadcast %328 : vector<1x128xi1> to vector<8x128xi1>
    %330 = vector.broadcast %cst_131 : f32 to vector<8x128xf32>
    %331 = arith.select %329, %327, %330 : vector<8x128xi1>, vector<8x128xf32>
    %332 = tpu.concatenate %296, %301, %306, %311, %291, %316, %321, %326, %331 in 0 : vector<8x128xf32>, vector<8x128xf32>, vector<8x128xf32>, vector<8x128xf32>, vector<8x128xf32>, vector<8x128xf32>, vector<8x128xf32>, vector<8x128xf32>, vector<8x128xf32> -> vector<72x128xf32>
    %333 = arith.truncf %332 : vector<72x128xf32> to vector<72x128xbf16>
    %cst_132 = arith.constant dense<0.000000e+00> : vector<8x128xf32>
    %334 = tpu.matmul %193, %333, %cst_132 {dimension_numbers = #tpu.dot_dimension_numbers<[1], [0], [0], [1], [0, 0, 1, 1], [], []>} : vector<8x72xbf16>, vector<72x128xbf16>, vector<8x128xf32> -> vector<8x128xf32>
    %335 = vector.extract_strided_slice %280 {offsets = [16, 0], sizes = [8, 128], strides = [1, 1]} : vector<24x128xf32> to vector<8x128xf32>
    %336 = arith.addf %334, %335 : vector<8x128xf32>
    %337 = math.tanh %336 : vector<8x128xf32>
    %338 = arith.subf %337, %189 : vector<8x128xf32>
    %339 = arith.mulf %290, %338 : vector<8x128xf32>
    %340 = arith.addf %189, %339 : vector<8x128xf32>
    %c0_133 = arith.constant 0 : index
    %c0_134 = arith.constant 0 : index
    %341 = vector.load %arg13[%c0_133, %c0_134] : memref<8x128xf32, #tpu.memory_space<vmem>>, vector<8x128xf32>
    tpu.vector_store %arg13[%c0_133, %c0_134], %340 {strides = array<i32>} : memref<8x128xf32, #tpu.memory_space<vmem>>, vector<8x128xf32>,
    %c3_i32 = arith.constant 3 : i32
    %342 = arith.cmpi eq, %arg0, %c3_i32 : i32
    %343 = arith.extui %342 : i1 to i32
    %c0_i32_135 = arith.constant 0 : i32
    %344 = arith.cmpi ne, %343, %c0_i32_135 : i32
    scf.if %344 {
      %c0_136 = arith.constant 0 : index
      %c0_137 = arith.constant 0 : index
      %345 = vector.load %arg11[%c0_136, %c0_137] : memref<8x128xf32, #tpu.memory_space<vmem>>, vector<8x128xf32>
      tpu.vector_store %arg11[%c0_136, %c0_137], %340 {strides = array<i32>} : memref<8x128xf32, #tpu.memory_space<vmem>>, vector<8x128xf32>,
    } else {
    }
    return
  }
  func.func @transform_0(%arg0: i32) -> (i32, i32, i32) {
    %c0_i32 = arith.constant 0 : i32
    %c0_i32_0 = arith.constant 0 : i32
    %c0_i32_1 = arith.constant 0 : i32
    return %arg0, %c0_i32, %c0_i32_0 : i32, i32, i32
  }
  func.func @transform_1(%arg0: i32) -> (i32, i32) {
    %c0_i32 = arith.constant 0 : i32
    %c0_i32_0 = arith.constant 0 : i32
    %c0_i32_1 = arith.constant 0 : i32
    return %c0_i32, %c0_i32_0 : i32, i32
  }
  func.func @transform_2(%arg0: i32) -> (i32, i32) {
    %c0_i32 = arith.constant 0 : i32
    %c0_i32_0 = arith.constant 0 : i32
    %c0_i32_1 = arith.constant 0 : i32
    return %c0_i32, %c0_i32_0 : i32, i32
  }
  func.func @transform_3(%arg0: i32) -> (i32, i32) {
    %c0_i32 = arith.constant 0 : i32
    %c0_i32_0 = arith.constant 0 : i32
    %c0_i32_1 = arith.constant 0 : i32
    return %c0_i32, %c0_i32_0 : i32, i32
  }
  func.func @transform_4(%arg0: i32) -> (i32, i32) {
    %c0_i32 = arith.constant 0 : i32
    %c0_i32_0 = arith.constant 0 : i32
    %c0_i32_1 = arith.constant 0 : i32
    return %c0_i32, %c0_i32_0 : i32, i32
  }
  func.func @transform_5(%arg0: i32) -> (i32, i32) {
    %c0_i32 = arith.constant 0 : i32
    %c0_i32_0 = arith.constant 0 : i32
    %c0_i32_1 = arith.constant 0 : i32
    return %c0_i32, %c0_i32_0 : i32, i32
  }
  func.func @transform_6(%arg0: i32) -> (i32, i32) {
    %c0_i32 = arith.constant 0 : i32
    %c0_i32_0 = arith.constant 0 : i32
    %c0_i32_1 = arith.constant 0 : i32
    return %c0_i32, %c0_i32_0 : i32, i32
  }
  func.func @transform_7(%arg0: i32) -> (i32, i32) {
    %c0_i32 = arith.constant 0 : i32
    %c0_i32_0 = arith.constant 0 : i32
    %c0_i32_1 = arith.constant 0 : i32
    return %c0_i32, %c0_i32_0 : i32, i32
  }
  func.func @transform_8(%arg0: i32) -> (i32, i32) {
    %c0_i32 = arith.constant 0 : i32
    %c0_i32_0 = arith.constant 0 : i32
    %c0_i32_1 = arith.constant 0 : i32
    return %c0_i32, %c0_i32_0 : i32, i32
  }
  func.func @transform_9(%arg0: i32) -> (i32, i32) {
    %c0_i32 = arith.constant 0 : i32
    %c0_i32_0 = arith.constant 0 : i32
    %c0_i32_1 = arith.constant 0 : i32
    return %c0_i32, %c0_i32_0 : i32, i32
  }
  func.func @transform_10(%arg0: i32) -> (i32, i32) {
    %c0_i32 = arith.constant 0 : i32
    %c0_i32_0 = arith.constant 0 : i32
    %c0_i32_1 = arith.constant 0 : i32
    return %c0_i32, %c0_i32_0 : i32, i32
  }
}

</mosaic_0001>

<bundles_post_ra>
// kernel: _lambda_.2
= control target key start
LH: loop header
LB: loop body
LE: loop exit
PB: predicated region body
PF: predicated region fallthrough
CT: control target
= control target key end

     0   :  { %s1363_s13 = smov 0   ;;  %s1746_s0 = inlined_call_operand.vmem [shape: f32[4,4,128], index: 0, kind: input, shape index: {}]   ;;  %s1747_s1 = inlined_call_operand.vmem [shape: s32[2,128], index: 1, kind: input, shape index: {}]   ;;  %s1748_s2 = inlined_call_operand.vmem [shape: bf16[12,36], index: 2, kind: input, shape index: {}]   ;;  %s1749_s3 = inlined_call_operand.vmem [shape: f32[12,1], index: 3, kind: input, shape index: {}]   ;;  %s1750_s4 = inlined_call_operand.vmem [shape: bf16[8,36], index: 4, kind: input, shape index: {}]   ;;  %s1751_s5 = inlined_call_operand.vmem [shape: bf16[4,36], index: 5, kind: input, shape index: {}]   ;;  %s1752_s6 = inlined_call_operand.vmem [shape: bf16[24,36], index: 6, kind: input, shape index: {}]   ;;  %s1753_s7 = inlined_call_operand.vmem [shape: f32[24,1], index: 7, kind: input, shape index: {}]   ;;  %s1754_s8 = inlined_call_operand.vmem [shape: bf16[16,72], index: 8, kind: input, shape index: {}]   ;;  %s1755_s9 = inlined_call_operand.vmem [shape: bf16[8,72], index: 9, kind: input, shape index: {}]   ;;  %s1756_s10 = inlined_call_operand.vmem [shape: f32[8,128], index: 10, kind: output, shape index: {}]  }
   0x1 LB: > { %s1369_s14 = sadd.s32 4294967295, %s1293_s13   ;;  %p1062_p0 = scmp.ge.s32.totalorder %s1293_s13, 1  ;;  %s1293_s13 = sphi %s1363_s13, %s20_s13  }
   0x2   : > { %p306_p1 = scmp.lt.s32.totalorder %s1293_s13, 5 }
   0x4   : > { %p307_p2 = pnand %p1062_p0, %p306_p1 }
   0x5   : > { %p338_p3 = scmp.lt.s32.totalorder (!%p307_p2), %s1369_s14, 3  ;;  %p1064_p4 = scmp.ne.s32.totalorder (!%p307_p2), %s1369_s14, 0 }
   0x6   : > { %310 = sbr.rel (%p307_p2) target bundleno = 1542 (0x606), region = 60 }
   0xd   : > { %s339_s15 = scalar_select %p338_p3, %s1369_s14, 3 }
   0xe   : > { %346 = sbr.rel (%p1064_p4) target bundleno = 21 (0x15), region = 64  ;;  %v1295_v0 = vmov (!%p1064_p4), 0.0  }
   0xf   : > { %s1063_s16 = sshll.u32 %s339_s15, 2  ;;  %347 = vst [vmem:[#allocation2] sm:$0xf] (!%p1064_p4), %v1295_v0  ;;  %348 = vst [vmem:[#allocation3] sm:$0xff] (!%p1064_p4), %v1295_v0 }
  0x10   : > { %s341_s19 = scalar_lea.vmem %s1746_s0, %s1063_s16 }
  0x15 PF: > { %v1379_v1 = vld [vmem:[%s341_s19] sm:$0xf]  ;;  %s1296_s20 = smov 9   ;;  %s1297_s21 = smov 8   ;;  %v1298_v4 = vmov 0.0   ;;  %v1299_v5 = vmov 0   ;;  %v373_v9 = vlaneseq }
  0x16   : > { %v1381_v2 = vld [vmem:[#allocation2] sm:$0xf]  ;;  %1135 = vmatprep.subr.bf16.mxu0 %v1298_v4  ;;  %1145 = vmatprep.subr.bf16.mxu1 %v1298_v4  ;;  %s1300_s22 = smov 7   ;;  %s1301_s23 = smov 1   ;;  %vm1304_vm0 = vmmov 0   ;;  %vm450_vm9 = vcmask 1043456  }
  0x17   : > { %v1235_v3 = vpack.i.bf16 %v1381_v2, %v1379_v1  ;;  %1250 = vset.pattern.permute.xlu1 %v1299_v5  ;;  %1251 = vset.pattern.permute.xlu0 %v1299_v5  ;;  %s1302_s24 = smov 120   ;;  %s1303_s25 = smov 127   ;;  %v366_v6 = vld [vmem:[%s1749_s3] sm:$0xff]  ;;  %v374_v13 = vshrl.u32 %v373_v9, 7 }
  0x18   : > { %1141 = vmatprep.mubr.msk.bf16.mxu0 %vm1304_vm0, %v1298_v4  ;;  %1151 = vmatprep.mubr.msk.bf16.mxu1 %vm1304_vm0, %v1298_v4  ;;  %s1305_s26 = smov 121   ;;  %s1306_s27 = smov 119   ;;  %v349_v7 = vld [vmem:[%s1747_s1] sm:$0x3] }
  0x19   : > { %1236 = vrot.lane.b32.xlu1 %v1235_v3, %s1296_s20  ;;  %1226 = vrot.lane.b32.xlu0 %v1235_v3, %s1297_s21  ;;  %vm350_vm1 = vcmp.ge.s32.totalorder %v349_v7, 1  ;;  %vm355_vm2 = vcmp.le.s32.totalorder %v349_v7, 6  ;;  %v1423_v15 = vsub.s32 0, %v374_v13  ;;  %v400_v16 = vsub.s32 1, %v374_v13  ;;  %p1103_p5 = scmp.ne.s32.totalorder %s1369_s14, 3 }
  0x1a   : > { %v351_v8 = vsel %vm350_vm1, 1, %v1299_v5  ;;  %v356_v10 = vsel %vm355_vm2, 1, %v1299_v5 }
  0x1b   : > { %v352_v11 = vrot.slane %v351_v8, 1  ;;  %v357_v12 = vrot.slane %v356_v10, 1  ;;  %v384_v18 = vrot.slane %v351_v8, %v1423_v15  ;;  %v1430_v20 = vrot.slane %v351_v8, %v400_v16 }
  0x1c   : > { %v426_v22 = vrot.slane %v356_v10, %v1423_v15  ;;  %v1445_v32 = vrot.slane %v356_v10, %v400_v16 }
  0x1d   : > { %1241 = vrot.lane.b32.xlu1 %v1235_v3, %s1300_s22  ;;  %1231 = vrot.lane.b32.xlu0 %v1235_v3, %s1301_s23  ;;  %vm353_vm3 = vcmp.ne.s32.totalorder %v352_v11, 0  ;;  %vm1419_vm4 = vcmp.ne.s32.totalorder %v357_v12, 0  ;;  %vm1435_vm8 = vcmp.eq.s32.totalorder %v384_v18, 1  ;;  %vm402_vm11 = vcmp.eq.s32.totalorder %v1430_v20, 1 }
  0x1e   : > { %vm354_vm5 = vmand %vm350_vm1, %vm353_vm3  ;;  %vm1455_vm13 = vcmp.eq.s32.totalorder %v426_v22, 1  ;;  %vm410_vm15 = vcmp.eq.s32.totalorder %v1445_v32, 1 }
  0x1f   : > { %vm359_vm6 = vmand %vm350_vm1, %vm1419_vm4  ;;  %v372_v17 = vsel %vm354_vm5, 1, %v1299_v5 }
  0x20   : > { %v389_v19 = vsel %vm359_vm6, 1, %v1299_v5  ;;  %vm360_vm7 = vmand %vm355_vm2, %vm353_vm3  ;;  %v376_v21 = vrot.slane %v372_v17, %v1423_v15  ;;  %vm520_vm3 = vcmask 1041408  }
  0x21   : > { %421 = vrot.lane.b32.xlu1 %v1379_v1, %s1302_s24  ;;  %1246 = vrot.lane.b32.xlu0 %v1235_v3, %s1303_s25  ;;  %v393_v26 = vrot.slane %v389_v19, %v1423_v15  ;;  %v414_v29 = vsel %vm360_vm7, 1, %v1299_v5  ;;  %vm361_vm10 = vmand %vm355_vm2, %vm1419_vm4  ;;  %vm516_vm4 = vcmask 293888   ;;  %vm1307_vm7 = vmmov 1  }
  0x22   : > { %vm1447_vm12 = vcmp.eq.s32.totalorder %v376_v21, 1  ;;  %v418_v41 = vrot.slane %v414_v29, %v1423_v15  ;;  %v431_v42 = vsel %vm361_vm10, 1, %v1299_v5  ;;  %vm1654_vm10 = vmpackc.low %vm410_vm15, %vm1307_vm7 }
  0x23   : > { %vm1459_vm14 = vcmp.eq.s32.totalorder %v393_v26, 1  ;;  %v435_v59 = vrot.slane %v431_v42, %v1423_v15  ;;  %vm1075_vm5 = vmpackc.low %vm1435_vm8, %vm1447_vm12 }
  0x24   : > { %vm1478_vm1 = vcmp.eq.s32.totalorder %v418_v41, 1  ;;  %v368_v41 = vld [vmem:[%s1750_s4] sm:$0xf]  ;;  %vm1634_vm6 = vmpackc.low %vm402_vm11, %vm1459_vm14 }
  0x25   : > { %476 = vrot.lane.b32.xlu1 %v1381_v2, %s1302_s24  ;;  %412 = vrot.lane.b32.xlu0 %v1379_v1, %s1305_s26  ;;  %vm1497_vm2 = vcmp.eq.s32.totalorder %v435_v59, 1  ;;  %v367_v59 = vld [vmem:[%s1749_s3 + $0x8] sm:$0xf] }
  0x29   : > { %429 = vrot.lane.b32.xlu1 %v1379_v1, %s1306_s27  ;;  %473 = vrot.lane.b32.xlu0 %v1381_v2, %s1305_s26 }
  0x2d   : > { %479 = vrot.lane.b32.xlu0 %v1381_v2, %s1306_s27  ;;  %503 = vperm.xlu1 %1250, %v366_v6  }
  0x8b   : > { %v1237_v23 = vpop.permute.xlu1 %1236  ;;  %v1227_v24 = vpop.permute.xlu0 %1226 }
  0x8c   : > { %v1229_v27 = vunpack.i.h.bf16 %v1227_v24  ;;  %v1228_v28 = vunpack.i.l.bf16 %v1227_v24  ;;  %v1239_v30 = vunpack.i.h.bf16 %v1237_v23  ;;  %v1238_v31 = vunpack.i.l.bf16 %v1237_v23 }
  0x8e   : > { %v386_v34 = vsel %vm1435_vm8, %v1228_v28, 0.0  ;;  %v463_v35 = vsel %vm1435_vm8, %v1229_v27, 0.0  ;;  %v378_v47 = vsel %vm1447_vm12, %v1238_v31, 0.0  ;;  %v460_v48 = vsel %vm1447_vm12, %v1239_v30, 0.0 }
  0x8f   : > { %v439_v37 = vrot.slane %v386_v34, 4  ;;  %v1242_v38 = vpop.permute.xlu1 %1241  ;;  %v1232_v40 = vpop.permute.xlu0 %1231  ;;  %v483_v49 = vrot.slane %v463_v35, 4  ;;  %v1267_v35 = vld [vmem:[%s1748_s2] sm:$0x3f]  }
  0x90   : > { %v1244_v43 = vunpack.i.h.bf16 %v1242_v38  ;;  %v1243_v44 = vunpack.i.l.bf16 %v1242_v38  ;;  %v1234_v45 = vunpack.i.h.bf16 %v1232_v40  ;;  %v1233_v46 = vunpack.i.l.bf16 %v1232_v40 }
  0x91   : > { %v451_v63 = vsel %vm450_vm9, %v378_v47, %v439_v37  ;;  %v494_v5 = vsel %vm450_vm9, %v460_v48, %v483_v49 }
  0x92   : > { %v395_v50 = vsel %vm1459_vm14, %v1243_v44, 0.0  ;;  %v466_v51 = vsel %vm1459_vm14, %v1244_v43, 0.0  ;;  %v403_v52 = vsel %vm402_vm11, %v1233_v46, 0.0  ;;  %v469_v53 = vsel %vm402_vm11, %v1234_v45, 0.0 }
  0x93   : > { %v442_v54 = vrot.slane %v403_v52, 4  ;;  %v486_v55 = vrot.slane %v469_v53, 4  ;;  %v422_v56 = vpop.permute.xlu1 %421  ;;  %v1247_v57 = vpop.permute.xlu0 %1246 }
  0x94   : > { %v428_v60 = vsel %vm1455_vm13, %v422_v56, 0.0  ;;  %v1249_v61 = vunpack.i.h.bf16 %v1247_v57  ;;  %v1248_v62 = vunpack.i.l.bf16 %v1247_v57 }
  0x95   : > { %v448_v0 = vrot.slane %v428_v60, 4  ;;  %v452_v3 = vsel %vm450_vm9, %v395_v50, %v442_v54  ;;  %v495_v6 = vsel %vm450_vm9, %v466_v51, %v486_v55 }
  0x96   : > { %v411_v7 = vsel %vm410_vm15, %v1248_v62, 0.0  ;;  %v472_v8 = vsel %vm410_vm15, %v1249_v61, 0.0  ;;  %v455_v9 = vpack.c.bf16 %v452_v3, %v451_v63  ;;  %v498_v10 = vpack.c.bf16 %v495_v6, %v494_v5 }
  0x97   : > { %v445_v11 = vrot.slane %v411_v7, 4  ;;  %v477_v12 = vpop.permute.xlu1 %476  ;;  %v413_v13 = vpop.permute.xlu0 %412  ;;  %v489_v17 = vrot.slane %v472_v8, 4 }
  0x98   : > { %v478_v14 = vsel %vm1455_vm13, %v477_v12, 0.0  ;;  %v420_v15 = vsel %vm1478_vm1, %v413_v13, 0.0  ;;  %1136 = vmatpush3.bf16.msra.mxu0 %v455_v9  ;;  %1146 = vmatpush3.bf16.msra.mxu1 %v498_v10 }
  0x99   : > { %v492_v18 = vrot.slane %v478_v14, 4  ;;  %v453_v19 = vsel %vm450_vm9, %v1379_v1, %v445_v11  ;;  %v454_v21 = vsel %vm450_vm9, %v420_v15, %v448_v0  ;;  %1137 = vmatprep.subr.bf16.mxu0 %v1298_v4  ;;  %1147 = vmatprep.subr.bf16.mxu1 %v1298_v4  ;;  %v496_v1 = vsel %vm450_vm9, %v1381_v2, %v489_v17 }
  0x9a   : > { %v456_v22 = vpack.c.bf16 %v454_v21, %v453_v19 }
  0x9b   : > { %v430_v23 = vpop.permute.xlu1 %429  ;;  %v474_v24 = vpop.permute.xlu0 %473 }
  0x9c   : > { %v437_v26 = vsel %vm1497_vm2, %v430_v23, 0.0  ;;  %v475_v27 = vsel %vm1478_vm1, %v474_v24, 0.0  ;;  %1138 = vmatpush3.bf16.msra.mxu0 %v456_v22 }
  0x9d   : > { %v457_v28 = vpack.c.bf16 %v437_v26, %v437_v26  ;;  %v497_v29 = vsel %vm450_vm9, %v475_v27, %v492_v18  ;;  %1139 = vmatprep.subr.bf16.mxu0 %v1298_v4 }
  0x9e   : > { %v499_v30 = vpack.c.bf16 %v497_v29, %v496_v1  ;;  %v369_v29 = vld [vmem:[%s1751_s5] sm:$0x3] }
  0x9f   : > { %v480_v31 = vpop.permute.xlu0 %479  ;;  %v522_v34 = vsel %vm520_vm3, %v457_v28, 0 }
  0xa0   : > { %v481_v37 = vsel %vm1497_vm2, %v480_v31, 0.0  ;;  %1140 = vmatpush3.bf16.msra.mxu0 %v522_v34  ;;  %1148 = vmatpush3.bf16.msra.mxu1 %v499_v30  ;;  %v1574_v30 = vld [vmem:[#allocation3] sm:$0xff] }
  0xa1   : > { %v500_v38 = vpack.c.bf16 %v481_v37, %v481_v37  ;;  %1149 = vmatprep.subr.bf16.mxu1 %v1298_v4  ;;  %1155 = vmatprep.subr.bf16.mxu0 %v1298_v4 }
  0xa3   : > { %1142 = vmatmul.mubr.msk.bf16.vlgmr.msra.gmra.mrb[0].mxu0 %vm516_vm4, %v1267_v35  ;;  %v569_v40 = vsel %vm520_vm3, %v500_v38, 0 }
  0xa4   : > { %1150 = vmatpush3.bf16.msra.mxu1 %v569_v40  ;;  %1161 = vmatprep.mubr.msk.bf16.mxu0 %vm1304_vm0, %v1298_v4 }
  0xa7   : > { %1152 = vmatmul.mubr.msk.bf16.vlgmr.msra.gmra.mrb[0].mxu1 %vm516_vm4, %v368_v41 }
  0xac   : > { %v504_v42 = vpop.permute.xlu1 %503 }
 0x176   : > { %v558_v43 = vpop.f32.mrb[0].mxu0 }
 0x177   : > { %v1143_v44 = vpop.f32.mrb[1].mxu0  ;;  %v559_v45 = vadd.f32 %v558_v43, %v504_v42 }
 0x178   : > { %v1530_v46 = vpop.f32.mrb[2].mxu0 }
 0x179   : > { %v1144_v47 = vpop.f32.mrb[3].mxu0 }
 0x17a   : > { %v605_v48 = vpop.f32.mrb[0].mxu1 }
 0x17b   : > { %v606_v49 = vadd.f32 %v605_v48, %v559_v45  ;;  %v1153_v50 = vpop.f32.mrb[1].mxu1 }
 0x17c   : > { %v608_v51 = vpop.f32.mrb[2].mxu1  ;;  %v722_v50 = vld [vmem:[%s1753_s7] sm:$0xff] }
 0x17d   : > { %v1068_v52 = vmul.f32 -1.442695, %v606_v49  ;;  %v1154_v53 = vpop.f32.mrb[3].mxu1 }
 0x17f   : > { %1271 = vpow2.f32 %v1068_v52 }
 0x189   : > { %v1272_v54 = vpop.eup %1271 }
 0x18a   : > { %v614_v55 = vadd.f32 1.0, %v1272_v54 }
 0x18c   : > { %1273 = vrcp.f32 %v614_v55 }
 0x196   : > { %v1274_v56 = vpop.eup %1273 }
 0x197   : > { %v617_v57 = vmul.f32 %v1274_v56, %v1381_v2 }
 0x199   : > { %627 = vrot.lane.b32.xlu1 %v617_v57, %s1301_s23  ;;  %621 = vrot.lane.b32.xlu0 %v617_v57, %s1297_s21 }
 0x19d   : > { %624 = vrot.lane.b32.xlu1 %v617_v57, %s1300_s22  ;;  %618 = vrot.lane.b32.xlu0 %v617_v57, %s1296_s20 }
 0x1a1   : > { %636 = vrot.lane.b32.xlu1 %v617_v57, %s1302_s24  ;;  %630 = vrot.lane.b32.xlu0 %v617_v57, %s1303_s25 }
 0x1a5   : > { %639 = vrot.lane.b32.xlu1 %v617_v57, %s1306_s27  ;;  %633 = vrot.lane.b32.xlu0 %v617_v57, %s1305_s26 }
 0x1a9   : > { %508 = vperm.xlu0 %1251, %v367_v59  }
 0x1ad   : > { %780 = vrot.lane.b32.xlu0 %v1574_v30, %s1301_s23 }
 0x20b   : > { %v628_v60 = vpop.permute.xlu1 %627  ;;  %v622_v61 = vpop.permute.xlu0 %621 }
 0x20c   : > { %v629_v62 = vsel %vm402_vm11, %v628_v60, 0.0  ;;  %v623_v63 = vsel %vm1435_vm8, %v622_v61, 0.0 }
 0x20d   : > { %v646_v0 = vrot.slane %v629_v62, 4  ;;  %v643_v3 = vrot.slane %v623_v63, 4 }
 0x20f   : > { %v625_v5 = vpop.permute.xlu1 %624  ;;  %v619_v6 = vpop.permute.xlu0 %618 }
 0x210   : > { %v626_v7 = vsel %vm1459_vm14, %v625_v5, 0.0  ;;  %v620_v8 = vsel %vm1447_vm12, %v619_v6, 0.0 }
 0x211   : > { %v655_v9 = vsel %vm450_vm9, %v626_v7, %v646_v0  ;;  %v654_v10 = vsel %vm450_vm9, %v620_v8, %v643_v3 }
 0x212   : > { %v658_v11 = vpack.c.bf16 %v655_v9, %v654_v10 }
 0x213   : > { %v637_v12 = vpop.permute.xlu1 %636  ;;  %v631_v13 = vpop.permute.xlu0 %630 }
 0x214   : > { %v638_v14 = vsel %vm1455_vm13, %v637_v12, 0.0  ;;  %v632_v15 = vsel %vm410_vm15, %v631_v13, 0.0  ;;  %1156 = vmatpush3.bf16.msra.mxu0 %v658_v11 }
 0x215   : > { %v649_v17 = vrot.slane %v632_v15, 4  ;;  %1157 = vmatprep.subr.bf16.mxu0 %v1298_v4  ;;  %v652_v18 = vrot.slane %v638_v14, 4 }
 0x217   : > { %v640_v19 = vpop.permute.xlu1 %639  ;;  %v634_v21 = vpop.permute.xlu0 %633  ;;  %v656_v24 = vsel %vm450_vm9, %v617_v57, %v649_v17 }
 0x218   : > { %v641_v22 = vsel %vm1497_vm2, %v640_v19, 0.0  ;;  %v635_v23 = vsel %vm1478_vm1, %v634_v21, 0.0 }
 0x219   : > { %v657_v26 = vsel %vm450_vm9, %v635_v23, %v652_v18  ;;  %v660_v28 = vpack.c.bf16 %v641_v22, %v641_v22 }
 0x21a   : > { %v659_v27 = vpack.c.bf16 %v657_v26, %v656_v24 }
 0x21b   : > { %v665_v1 = vsel %vm520_vm3, %v660_v28, 0 }
 0x21c   : > { %1158 = vmatpush3.bf16.msra.mxu0 %v659_v27 }
 0x21d   : > { %1159 = vmatprep.subr.bf16.mxu0 %v1298_v4 }
 0x220   : > { %1160 = vmatpush3.bf16.msra.mxu0 %v665_v1 }
 0x221   : > { %1175 = vmatprep.subr.bf16.mxu0 %v1298_v4 }
 0x223   : > { %1162 = vmatmul.mubr.msk.bf16.vlgmr.msra.gmra.mrb[4].mxu0 %vm516_vm4, %v369_v29 }
 0x224   : > { %1185 = vmatprep.mubr.msk.bf16.mxu0 %vm1304_vm0, %v1298_v4 }
 0x228   : > { %v509_v31 = vpop.permute.xlu0 %508 }
 0x229   : > { %v562_v34 = vadd.f32 %v1530_v46, %v509_v31 }
 0x22c   : > { %v781_v51 = vpop.permute.xlu0 %780 }
 0x2f6   : > { %v701_v35 = vpop.f32.mrb[4].mxu0 }
 0x2f7   : > { %v702_v37 = vadd.f32 %v701_v35, %v562_v34  ;;  %v1163_v38 = vpop.f32.mrb[5].mxu0 }
 0x2f8   : > { %v704_v40 = vpop.f32.mrb[6].mxu0 }
 0x2f9   : > { %1275 = vtanh.f32 %v702_v37  ;;  %v1164_v41 = vpop.f32.mrb[7].mxu0 }
 0x303   : > { %v1276_v42 = vpop.eup %1275 }
 0x304   : > { %v708_v43 = vsub.f32 %v1276_v42, %v1381_v2  ;;  %v1269_v42 = vld [vmem:[%s1752_s6 + $0x8] ss:$0 sps:$4 sm:$0xff]  }
 0x306   : > { %v710_v44 = vrot.slane %v708_v43, 4 }
 0x308   : > { %v712_v45 = vmul.f32 %v1274_v56, %v710_v44  ;;  %v1270_v44 = vld [vmem:[%s1754_s8] sm:$0xff]  }
 0x30a   : > { %v714_v47 = vrot.slane %v712_v45, 4 }
 0x30c   : > { %v1581_v48 = vadd.f32 %v714_v47, %v1381_v2  ;;  %v1268_v2 = vld [vmem:[%s1752_s6] sm:$0xff]  }
 0x30d   : > { %1171 = vmatprep.mubr.msk.bf16.mxu1 %vm516_vm4, %v1268_v2 }
 0x30e   : > { %717 = vst [vmem:[#allocation2] sm:$0xf] %v1581_v48  ;;  %v1257_v46 = vpack.i.bf16 %v1581_v48, %v1574_v30  ;;  %v1252_v49 = vpack.i.bf16 %v1574_v30, %v1581_v48 }
 0x310   : > { %1258 = vrot.lane.b32.xlu0 %v1257_v46, %s1296_s20  ;;  %1253 = vrot.lane.b32.xlu1 %v1252_v49, %s1297_s21 }
 0x314   : > { %740 = vrot.lane.b32.xlu0 %v1581_v48, %s1303_s25  ;;  %737 = vrot.lane.b32.xlu1 %v1581_v48, %s1301_s23 }
 0x318   : > { %1263 = vrot.lane.b32.xlu1 %v1252_v49, %s1300_s22  ;;  %783 = vrot.lane.b32.xlu0 %v1574_v30, %s1303_s25 }
 0x31c   : > { %746 = vrot.lane.b32.xlu1 %v1581_v48, %s1302_s24  ;;  %786 = vrot.lane.b32.xlu0 %v1574_v30, %s1305_s26 }
 0x320   : > { %743 = vrot.lane.b32.xlu1 %v1581_v48, %s1305_s26  ;;  %792 = vrot.lane.b32.xlu0 %v1574_v30, %s1306_s27 }
 0x324   : > { %749 = vrot.lane.b32.xlu1 %v1581_v48, %s1306_s27 }
 0x328   : > { %789 = vrot.lane.b32.xlu1 %v1574_v30, %s1302_s24 }
 0x32c   : > { %802 = vperm.xlu1 %1250, %v722_v50  }
 0x382   : > { %v1259_v52 = vpop.permute.xlu0 %1258  ;;  %v1254_v53 = vpop.permute.xlu1 %1253 }
 0x383   : > { %v1260_v54 = vunpack.i.l.bf16 %v1259_v52  ;;  %v1256_v55 = vunpack.i.h.bf16 %v1254_v53  ;;  %v1255_v56 = vunpack.i.l.bf16 %v1254_v53  ;;  %v1261_v62 = vunpack.i.h.bf16 %v1259_v52 }
 0x385   : > { %v1076_v57 = vpack.c.bf16 %v1256_v55, %v1260_v54  ;;  %v733_v61 = vsel %vm1435_vm8, %v1255_v56, 0.0  ;;  %v730_v10 = vsel %vm1447_vm12, %v1261_v62, 0.0  ;;  %v723_v62 = vld [vmem:[%s1753_s7 + $0x8] sm:$0xff] }
 0x386   : > { %v741_v59 = vpop.permute.xlu0 %740  ;;  %v738_v60 = vpop.permute.xlu1 %737  ;;  %v753_v0 = vrot.slane %v733_v61, 4  ;;  %v724_v61 = vld [vmem:[%s1753_s7 + $0x10] sm:$0xff] }
 0x387   : > { %1176 = vmatpush3.bf16.msk.msra.mxu0 %vm1075_vm5, %v1076_v57  ;;  %v739_v63 = vsel %vm402_vm11, %v738_v60, 0.0  ;;  %v742_v11 = vsel %vm410_vm15, %v741_v59, 0.0  ;;  %vm1084_vm11 = vmpackc.low %vm1455_vm13, %vm1478_vm1 }
 0x388   : > { %1177 = vmatprep.subr.bf16.mxu0 %v1298_v4  ;;  %v756_v8 = vrot.slane %v739_v63, 4  ;;  %v764_v15 = vsel %vm450_vm9, %v730_v10, %v753_v0  ;;  %v759_v22 = vrot.slane %v742_v11, 4 }
 0x38a   : > { %v1264_v3 = vpop.permute.xlu1 %1263  ;;  %v784_v5 = vpop.permute.xlu0 %783  ;;  %v766_v27 = vsel %vm450_vm9, %v1581_v48, %v759_v22 }
 0x38b   : > { %v1266_v6 = vunpack.i.h.bf16 %v1264_v3  ;;  %v1265_v7 = vunpack.i.l.bf16 %v1264_v3  ;;  %v1082_v21 = vpack.c.bf16 %v784_v5, %v1574_v30 }
 0x38d   : > { %v1079_v12 = vpack.c.bf16 %v781_v51, %v1266_v6  ;;  %v736_v13 = vsel %vm1459_vm14, %v1265_v7, 0.0  ;;  %vm885_vm14 = vcmask 588800  }
 0x38e   : > { %v747_v14 = vpop.permute.xlu1 %746  ;;  %v765_v17 = vsel %vm450_vm9, %v736_v13, %v756_v8  ;;  %v787_v20 = vpop.permute.xlu0 %786 }
 0x38f   : > { %v748_v18 = vsel %vm1455_vm13, %v747_v14, 0.0  ;;  %1178 = vmatpush3.bf16.msk.msra.mxu0 %vm1634_vm6, %v1079_v12  ;;  %v768_v19 = vpack.c.bf16 %v765_v17, %v764_v15  ;;  %v727_v15 = vld [vmem:[%s1755_s9] sm:$0xf] }
 0x390   : > { %1179 = vmatprep.subr.bf16.mxu0 %v1298_v4  ;;  %v762_v23 = vrot.slane %v748_v18, 4 }
 0x391   : > { %1165 = vmatprep.subr.bf16.mxu1 %v768_v19 }
 0x392   : > { %v744_v24 = vpop.permute.xlu1 %743  ;;  %1166 = vmatpush3.bf16.msra.mxu1 %v768_v19  ;;  %v793_v32 = vpop.permute.xlu0 %792 }
 0x393   : > { %v745_v26 = vsel %vm1478_vm1, %v744_v24, 0.0  ;;  %1180 = vmatpush3.bf16.msk.msra.mxu0 %vm1654_vm10, %v1082_v21  ;;  %v794_v34 = vsel %vm1497_vm2, %v793_v32, 0.0 }
 0x394   : > { %v767_v28 = vsel %vm450_vm9, %v745_v26, %v762_v23  ;;  %1181 = vmatprep.subr.bf16.mxu0 %v1298_v4  ;;  %v799_v40 = vpack.c.bf16 %v794_v34, %v794_v34 }
 0x395   : > { %v769_v1 = vpack.c.bf16 %v767_v28, %v766_v27 }
 0x396   : > { %v750_v29 = vpop.permute.xlu1 %749  ;;  %v890_v43 = vsel %vm450_vm9, %v799_v40, 0 }
 0x397   : > { %v751_v31 = vsel %vm1497_vm2, %v750_v29, 0.0  ;;  %1167 = vmatprep.subr.bf16.mxu1 %v769_v1 }
 0x398   : > { %v770_v35 = vpack.c.bf16 %v751_v31, %v751_v31  ;;  %1168 = vmatpush3.bf16.msra.mxu1 %v769_v1 }
 0x39a   : > { %v830_v37 = vsel %vm520_vm3, %v770_v35, 0  ;;  %v790_v38 = vpop.permute.xlu1 %789  ;;  %1203 = vmatprep.subr.msk.bf16.mxu1 %vm520_vm3, %v770_v35 }
 0x39b   : > { %v1085_v41 = vpack.c.bf16 %v790_v38, %v787_v20 }
 0x39c   : > { %1170 = vmatpush3.bf16.msra.mxu1 %v830_v37 }
 0x39d   : > { %1182 = vmatpush3.bf16.msk.msra.mxu0 %vm1084_vm11, %v1085_v41  ;;  %1189 = vmatprep.subr.bf16.mxu1 %v1298_v4 }
 0x39e   : > { %1183 = vmatprep.subr.bf16.mxu0 %v1298_v4 }
 0x39f   : > { %1172 = vmatmul.mubr.msk.bf16.vlgmr.msra.gmra.mrb[4].mxu1 %vm516_vm4, %v1269_v42 }
 0x3a0   : > { %1199 = vmatprep.mubr.msk.bf16.mxu1 %vm1304_vm0, %v1298_v4 }
 0x3a1   : > { %1184 = vmatpush3.bf16.msra.mxu0 %v890_v43 }
 0x3a4   : > { %1186 = vmatmul.mubr.msk.bf16.vlgmr.msra.gmra.mrb[8].mxu0 %vm885_vm14, %v1270_v44 }
 0x3ab   : > { %v803_v46 = vpop.permute.xlu1 %802 }
 0x472   : > { %v1694_v45 = vpop.f32.mrb[4].mxu1 }
 0x473   : > { %v866_v47 = vpop.f32.mrb[5].mxu1 }
 0x474   : > { %v1174_v48 = vpop.f32.mrb[6].mxu1  ;;  %v867_v2 = vadd.f32 %v866_v47, %v803_v46 }
 0x475   : > { %v869_v49 = vpop.f32.mrb[7].mxu1 }
 0x477   : > { %v926_v50 = vpop.f32.mrb[8].mxu0 }
 0x478   : > { %v927_v51 = vadd.f32 %v926_v50, %v867_v2  ;;  %v1187_v52 = vpop.f32.mrb[9].mxu0 }
 0x479   : > { %v929_v53 = vpop.f32.mrb[10].mxu0 }
 0x47a   : > { %v1088_v54 = vmul.f32 -1.442695, %v927_v51  ;;  %v1188_v55 = vpop.f32.mrb[11].mxu0 }
 0x47c   : > { %1277 = vpow2.f32 %v1088_v54 }
 0x486   : > { %v1278_v56 = vpop.eup %1277 }
 0x487   : > { %v939_v57 = vadd.f32 1.0, %v1278_v56 }
 0x489   : > { %1279 = vrcp.f32 %v939_v57 }
 0x493   : > { %v1280_v59 = vpop.eup %1279 }
 0x494   : > { %v945_v60 = vmul.f32 %v1280_v59, %v1574_v30 }
 0x496   : > { %949 = vrot.lane.b32.xlu1 %v945_v60, %s1297_s21  ;;  %946 = vrot.lane.b32.xlu0 %v945_v60, %s1296_s20 }
 0x49a   : > { %955 = vrot.lane.b32.xlu1 %v945_v60, %s1301_s23  ;;  %952 = vrot.lane.b32.xlu0 %v945_v60, %s1300_s22 }
 0x49e   : > { %961 = vrot.lane.b32.xlu1 %v945_v60, %s1305_s26  ;;  %958 = vrot.lane.b32.xlu0 %v945_v60, %s1303_s25 }
 0x4a2   : > { %967 = vrot.lane.b32.xlu1 %v945_v60, %s1306_s27  ;;  %964 = vrot.lane.b32.xlu0 %v945_v60, %s1302_s24 }
 0x4a6   : > { %812 = vperm.xlu1 %1250, %v724_v61   ;;  %807 = vperm.xlu0 %1251, %v723_v62  }
 0x508   : > { %v950_v63 = vpop.permute.xlu1 %949  ;;  %v947_v0 = vpop.permute.xlu0 %946 }
 0x509   : > { %v1091_v3 = vpack.c.bf16 %v950_v63, %v947_v0 }
 0x50b   : > { %1190 = vmatpush3.bf16.msk.msra.mxu1 %vm1075_vm5, %v1091_v3 }
 0x50c   : > { %v956_v5 = vpop.permute.xlu1 %955  ;;  %v953_v6 = vpop.permute.xlu0 %952  ;;  %1191 = vmatprep.subr.bf16.mxu1 %v1298_v4 }
 0x50d   : > { %v1094_v7 = vpack.c.bf16 %v956_v5, %v953_v6 }
 0x50f   : > { %1192 = vmatpush3.bf16.msk.msra.mxu1 %vm1634_vm6, %v1094_v7 }
 0x510   : > { %v962_v8 = vpop.permute.xlu1 %961  ;;  %v959_v10 = vpop.permute.xlu0 %958  ;;  %1193 = vmatprep.subr.bf16.mxu1 %v1298_v4 }
 0x511   : > { %v1097_v11 = vpack.c.bf16 %v959_v10, %v945_v60 }
 0x513   : > { %1194 = vmatpush3.bf16.msk.msra.mxu1 %vm1654_vm10, %v1097_v11 }
 0x514   : > { %v968_v25 = vpop.permute.xlu1 %967  ;;  %v965_v33 = vpop.permute.xlu0 %964  ;;  %1195 = vmatprep.subr.bf16.mxu1 %v1298_v4 }
 0x515   : > { %v969_v12 = vsel %vm1497_vm2, %v968_v25, 0.0  ;;  %v1100_v13 = vpack.c.bf16 %v965_v33, %v962_v8 }
 0x516   : > { %v974_v14 = vpack.c.bf16 %v969_v12, %v969_v12 }
 0x517   : > { %1196 = vmatpush3.bf16.msk.msra.mxu1 %vm1084_vm11, %v1100_v13 }
 0x518   : > { %1197 = vmatprep.subr.bf16.mxu1 %v1298_v4  ;;  %v979_v9 = vsel %vm450_vm9, %v974_v14, 0 }
 0x51b   : > { %1198 = vmatpush3.bf16.msra.mxu1 %v979_v9 }
 0x51e   : > { %1200 = vmatmul.mubr.msk.bf16.vlgmr.msra.gmra.mrb[8].mxu1 %vm885_vm14, %v727_v15 }
 0x525   : > { %v808_v16 = vpop.permute.xlu0 %807  ;;  %v813_v36 = vpop.permute.xlu1 %812 }
 0x526   : > { %v870_v17 = vadd.f32 %v869_v49, %v808_v16  ;;  %v875_v19 = vadd.f32 %v1694_v45, %v813_v36 }
 0x528   : > { %v930_v20 = vadd.f32 %v929_v53, %v870_v17 }
 0x52a   : > { %v1089_v18 = vmul.f32 -1.442695, %v930_v20 }
 0x52c   : > { %1281 = vpow2.f32 %v1089_v18 }
 0x536   : > { %v1282_v58 = vpop.eup %1281 }
 0x537   : > { %v940_v4 = vadd.f32 1.0, %v1282_v58 }
 0x5f1   : > { %v1015_v21 = vpop.f32.mrb[8].mxu1 }
 0x5f2   : > { %v1016_v22 = vadd.f32 %v1015_v21, %v875_v19  ;;  %v1201_v39 = vpop.f32.mrb[9].mxu1 }
 0x5f3   : > { %v1018_v23 = vpop.f32.mrb[10].mxu1 }
 0x5f4   : > { %1283 = vtanh.f32 %v1016_v22  ;;  %v1202_v24 = vpop.f32.mrb[11].mxu1 }
 0x5f5   : > { %1285 = vrcp.f32 %v940_v4 }
 0x5fe   : > { %v1284_v26 = vpop.eup %1283 }
 0x5ff   : > { %v1022_v27 = vsub.f32 %v1284_v26, %v1574_v30  ;;  %v1286_v28 = vpop.eup %1285  ;;  %1029 = sbr.rel (%p1103_p5) target bundleno = 1542 (0x606), region = 68 }
 0x601   : > { %v1023_v32 = vmul.f32 %v1286_v28, %v1022_v27 }
 0x603   : > { %v1024_v1 = vadd.f32 %v1023_v32, %v1574_v30 }
 0x605   : > { %1025 = vst [vmem:[#allocation3] sm:$0xff] %v1024_v1  ;;  %1030 = vst [vmem:[%s1756_s10] sm:$0xff] (!%p1103_p5), %v1024_v1 }
 0x606 PF: > { %s20_s13 = sadd.s32 1, %s1293_s13  }
 0x607   : > { %p17_p6 = scmp.ge.s32.totalorder %s20_s13, 6  }
 0x609   :  { %19 = sbr.rel (!%p17_p6) target bundleno = 1 (0x1), region = 94 }

// kernel: _lambda_.3
= control target key start
LH: loop header
LB: loop body
LE: loop exit
PB: predicated region body
PF: predicated region fallthrough
CT: control target
= control target key end

     0   :  { %v1849_v36 = vmov 1983009808   ;;  %v28_v38 = vlaneseq  ;;  %s2398_s0 = inlined_call_operand.vmem [shape: f32[2,512], index: 0, kind: input, shape index: {}]   ;;  %s2399_s1 = inlined_call_operand.vmem [shape: bf16[512,512], index: 1, kind: input, shape index: {}]   ;;  %s2400_s2 = inlined_call_operand.vmem [shape: f32[1,512], index: 2, kind: input, shape index: {}]   ;;  %s2401_s3 = inlined_call_operand.vmem [shape: bf16[512,20], index: 3, kind: input, shape index: {}]   ;;  %s2402_s4 = inlined_call_operand.vmem [shape: f32[1,20], index: 4, kind: input, shape index: {}]   ;;  %s2403_s5 = inlined_call_operand.hbm [shape: f32[2,20], index: 5, kind: output, shape index: {}]  }
   0x1   :  { %v1596_v0 = vld [vmem:[%s2399_s1 + $0x4] ss:$16 sps:$4 sm:$0xff]   ;;  %v1598_v1 = vld [vmem:[%s2399_s1 + $0xc] ss:$16 sps:$4 sm:$0xff]   ;;  %v1600_v2 = vld [vmem:[%s2399_s1] ss:$16 sps:$4 sm:$0xff]   ;;  %v26_v37 = vunpack.c.l.s4 %v1849_v36 }
   0x2   :  { %839 = vmatprep.subr.bf16.mxu0 %v1596_v0  ;;  %v1601_v3 = vld [vmem:[%s2399_s1 + $0x8] ss:$16 sps:$4 sm:$0xff]   ;;  %921 = vmatprep.subr.bf16.mxu1 %v1598_v1  ;;  %v1602_v4 = vld [vmem:[%s2399_s1 + $0x24] ss:$16 sps:$4 sm:$0xff]   ;;  %v1604_v5 = vld [vmem:[%s2399_s1 + $0x2c] ss:$16 sps:$4 sm:$0xff]  }
   0x3   :  { %840 = vmatpush1.bf16.msra.mxu0 %v1600_v2  ;;  %922 = vmatpush1.bf16.msra.mxu1 %v1601_v3  ;;  %v1606_v6 = vld [vmem:[%s2399_s1 + $0x20] ss:$16 sps:$4 sm:$0xff]   ;;  %v1607_v7 = vld [vmem:[%s2399_s1 + $0x28] ss:$16 sps:$4 sm:$0xff]   ;;  %v1608_v8 = vld [vmem:[%s2399_s1 + $0x44] ss:$16 sps:$4 sm:$0xff]   ;;  %v27_v42 = vunpack.c.0.s8 %v26_v37 }
   0x4   :  { %841 = vmatprep.subr.bf16.mxu0 %v1602_v4  ;;  %923 = vmatprep.subr.bf16.mxu1 %v1604_v5  ;;  %v1610_v9 = vld [vmem:[%s2399_s1 + $0x4c] ss:$16 sps:$4 sm:$0xff]   ;;  %v1612_v10 = vld [vmem:[%s2399_s1 + $0x40] ss:$16 sps:$4 sm:$0xff]   ;;  %v1613_v11 = vld [vmem:[%s2399_s1 + $0x48] ss:$16 sps:$4 sm:$0xff]  }
   0x5   :  { %v1614_v12 = vld [vmem:[%s2399_s1 + $0x64] ss:$16 sps:$4 sm:$0xff]   ;;  %v1616_v13 = vld [vmem:[%s2399_s1 + $0x6c] ss:$16 sps:$4 sm:$0xff]   ;;  %v1618_v14 = vld [vmem:[%s2399_s1 + $0x60] ss:$16 sps:$4 sm:$0xff]  }
   0x6   :  { %v1619_v15 = vld [vmem:[%s2399_s1 + $0x68] ss:$16 sps:$4 sm:$0xff]   ;;  %v1620_v16 = vld [vmem:[%s2399_s1 + $0x84] ss:$16 sps:$4 sm:$0xff]   ;;  %v1622_v17 = vld [vmem:[%s2399_s1 + $0x8c] ss:$16 sps:$4 sm:$0xff]  }
   0x7   :  { %842 = vmatpush1.bf16.msra.mxu0 %v1606_v6  ;;  %924 = vmatpush1.bf16.msra.mxu1 %v1607_v7  ;;  %v1624_v18 = vld [vmem:[%s2399_s1 + $0x80] ss:$16 sps:$4 sm:$0xff]   ;;  %v1625_v19 = vld [vmem:[%s2399_s1 + $0x88] ss:$16 sps:$4 sm:$0xff]   ;;  %v1626_v20 = vld [vmem:[%s2399_s1 + $0xa4] ss:$16 sps:$4 sm:$0xff]  }
   0x8   :  { %843 = vmatprep.subr.bf16.mxu0 %v1608_v8  ;;  %925 = vmatprep.subr.bf16.mxu1 %v1610_v9  ;;  %v1628_v21 = vld [vmem:[%s2399_s1 + $0xac] ss:$16 sps:$4 sm:$0xff]   ;;  %v1630_v22 = vld [vmem:[%s2399_s1 + $0xa0] ss:$16 sps:$4 sm:$0xff]   ;;  %v1631_v23 = vld [vmem:[%s2399_s1 + $0xa8] ss:$16 sps:$4 sm:$0xff]  }
   0x9   :  { %v1632_v24 = vld [vmem:[%s2399_s1 + $0xc4] ss:$16 sps:$4 sm:$0xff]   ;;  %v1634_v25 = vld [vmem:[%s2399_s1 + $0xcc] ss:$16 sps:$4 sm:$0xff]   ;;  %v1636_v26 = vld [vmem:[%s2399_s1 + $0xc0] ss:$16 sps:$4 sm:$0xff]  }
   0xa   :  { %v1637_v27 = vld [vmem:[%s2399_s1 + $0xc8] ss:$16 sps:$4 sm:$0xff]   ;;  %v1638_v28 = vld [vmem:[%s2399_s1 + $0xe4] ss:$16 sps:$4 sm:$0xff]   ;;  %v1640_v29 = vld [vmem:[%s2399_s1 + $0xec] ss:$16 sps:$4 sm:$0xff]  }
   0xb   :  { %844 = vmatpush1.bf16.msra.mxu0 %v1612_v10  ;;  %926 = vmatpush1.bf16.msra.mxu1 %v1613_v11  ;;  %v1642_v30 = vld [vmem:[%s2399_s1 + $0xe0] ss:$16 sps:$4 sm:$0xff]   ;;  %v1643_v31 = vld [vmem:[%s2399_s1 + $0xe8] ss:$16 sps:$4 sm:$0xff]   ;;  %v1644_v32 = vld [vmem:[%s2399_s1 + $0x104] ss:$16 sps:$4 sm:$0xff]  }
   0xc   :  { %845 = vmatprep.subr.bf16.mxu0 %v1614_v12  ;;  %927 = vmatprep.subr.bf16.mxu1 %v1616_v13  ;;  %v1646_v33 = vld [vmem:[%s2399_s1 + $0x10c] ss:$16 sps:$4 sm:$0xff]   ;;  %v1648_v34 = vld [vmem:[%s2399_s1 + $0x100] ss:$16 sps:$4 sm:$0xff]   ;;  %v1649_v35 = vld [vmem:[%s2399_s1 + $0x108] ss:$16 sps:$4 sm:$0xff]  }
   0xd   :  { %v1650_v39 = vld [vmem:[%s2399_s1 + $0x124] ss:$16 sps:$4 sm:$0xff]   ;;  %v1652_v40 = vld [vmem:[%s2399_s1 + $0x12c] ss:$16 sps:$4 sm:$0xff]   ;;  %v1654_v41 = vld [vmem:[%s2399_s1 + $0x120] ss:$16 sps:$4 sm:$0xff]  }
   0xe   :  { %v1998_v43 = vshrl.u32 %v28_v38, 7  ;;  %v1655_v44 = vld [vmem:[%s2399_s1 + $0x128] ss:$16 sps:$4 sm:$0xff]   ;;  %v1656_v45 = vld [vmem:[%s2399_s1 + $0x144] ss:$16 sps:$4 sm:$0xff]  }
   0xf   :  { %846 = vmatpush1.bf16.msra.mxu0 %v1618_v14  ;;  %928 = vmatpush1.bf16.msra.mxu1 %v1619_v15  ;;  %v1658_v46 = vld [vmem:[%s2399_s1 + $0x14c] ss:$16 sps:$4 sm:$0xff]   ;;  %v1660_v47 = vld [vmem:[%s2399_s1 + $0x140] ss:$16 sps:$4 sm:$0xff]   ;;  %v1661_v48 = vld [vmem:[%s2399_s1 + $0x148] ss:$16 sps:$4 sm:$0xff]  }
  0x10   :  { %847 = vmatprep.subr.bf16.mxu0 %v1620_v16  ;;  %929 = vmatprep.subr.bf16.mxu1 %v1622_v17  ;;  %v30_v49 = vsub.s32 %v27_v42, %v1998_v43  ;;  %v1662_v50 = vld [vmem:[%s2399_s1 + $0x164] ss:$16 sps:$4 sm:$0xff]   ;;  %v1664_v51 = vld [vmem:[%s2399_s1 + $0x16c] ss:$16 sps:$4 sm:$0xff]   ;;  %v1666_v53 = vld [vmem:[%s2399_s1 + $0x160] ss:$16 sps:$4 sm:$0xff]  }
  0x11   :  { %v22_v52 = vld [vmem:[%s2398_s0] sm:$0xff]  ;;  %v1667_v55 = vld [vmem:[%s2399_s1 + $0x168] ss:$16 sps:$4 sm:$0xff]   ;;  %v1670_v57 = vld [vmem:[%s2399_s1 + $0x18c] ss:$16 sps:$4 sm:$0xff]  }
  0x12   :  { %v31_v54 = vrot.slane %v22_v52, %v30_v49  ;;  %v1668_v56 = vld [vmem:[%s2399_s1 + $0x184] ss:$16 sps:$4 sm:$0xff]   ;;  %v1672_v59 = vld [vmem:[%s2399_s1 + $0x180] ss:$16 sps:$4 sm:$0xff]   ;;  %v1673_v61 = vld [vmem:[%s2399_s1 + $0x188] ss:$16 sps:$4 sm:$0xff]   ;;  %v24_v4 = vcombine.high %v22_v52, %v22_v52 }
  0x13   :  { %848 = vmatpush1.bf16.msra.mxu0 %v1624_v18  ;;  %930 = vmatpush1.bf16.msra.mxu1 %v1625_v19  ;;  %v1674_v62 = vld [vmem:[%s2399_s1 + $0x1a4] ss:$16 sps:$4 sm:$0xff]   ;;  %v1676_v63 = vld [vmem:[%s2399_s1 + $0x1ac] ss:$16 sps:$4 sm:$0xff]   ;;  %v1678_v0 = vld [vmem:[%s2399_s1 + $0x1a0] ss:$16 sps:$4 sm:$0xff]  }
  0x14   :  { %849 = vmatprep.subr.bf16.mxu0 %v1626_v20  ;;  %931 = vmatprep.subr.bf16.mxu1 %v1628_v21  ;;  %v39_v58 = vcombine.high %v31_v54, %v31_v54  ;;  %v1679_v1 = vld [vmem:[%s2399_s1 + $0x1a8] ss:$16 sps:$4 sm:$0xff]   ;;  %v1680_v2 = vld [vmem:[%s2399_s1 + $0x1c4] ss:$16 sps:$4 sm:$0xff]   ;;  %v1682_v3 = vld [vmem:[%s2399_s1 + $0x1cc] ss:$16 sps:$4 sm:$0xff]   ;;  %v2073_v9 = vrot.slane %v24_v4, %v30_v49  ;;  %v45_v16 = vpack.c.bf16 %v31_v54, %v31_v54 }
  0x15   :  { %v1684_v5 = vld [vmem:[%s2399_s1 + $0x1c0] ss:$16 sps:$4 sm:$0xff]   ;;  %v1685_v6 = vld [vmem:[%s2399_s1 + $0x1c8] ss:$16 sps:$4 sm:$0xff]   ;;  %v1686_v7 = vld [vmem:[%s2399_s1 + $0x1e4] ss:$16 sps:$4 sm:$0xff]  }
  0x16   :  { %v46_v60 = vpack.c.bf16 %v39_v58, %v39_v58  ;;  %v1688_v8 = vld [vmem:[%s2399_s1 + $0x1ec] ss:$16 sps:$4 sm:$0xff]   ;;  %v1690_v10 = vld [vmem:[%s2399_s1 + $0x1e0] ss:$16 sps:$4 sm:$0xff]   ;;  %v1691_v11 = vld [vmem:[%s2399_s1 + $0x1e8] ss:$16 sps:$4 sm:$0xff]   ;;  %v40_v14 = vcombine.high %v2073_v9, %v2073_v9 }
  0x17   :  { %850 = vmatpush1.bf16.msra.mxu0 %v1630_v22  ;;  %932 = vmatpush1.bf16.msra.mxu1 %v1631_v23  ;;  %v1695_v12 = vld [vmem:[%s2399_s1 + $0x204] ss:$16 sps:$4 sm:$0xff]   ;;  %v1698_v13 = vld [vmem:[%s2399_s1 + $0x20c] ss:$16 sps:$4 sm:$0xff]   ;;  %v1693_v15 = vld [vmem:[%s2399_s1 + $0x200] ss:$16 sps:$4 sm:$0xff]  }
  0x18   :  { %851 = vmatprep.subr.bf16.mxu0 %v1632_v24  ;;  %933 = vmatprep.subr.bf16.mxu1 %v1634_v25  ;;  %v1696_v17 = vld [vmem:[%s2399_s1 + $0x208] ss:$16 sps:$4 sm:$0xff]   ;;  %v1701_v18 = vld [vmem:[%s2399_s1 + $0x224] ss:$16 sps:$4 sm:$0xff]   ;;  %v1704_v19 = vld [vmem:[%s2399_s1 + $0x22c] ss:$16 sps:$4 sm:$0xff]   ;;  %v48_v20 = vpack.c.bf16 %v40_v14, %v40_v14 }
  0x19   :  { %871 = vmatprep.mubr.bf16.mxu0 %v46_v60  ;;  %953 = vmatprep.mubr.bf16.mxu1 %v46_v60  ;;  %v1699_v21 = vld [vmem:[%s2399_s1 + $0x220] ss:$16 sps:$4 sm:$0xff]   ;;  %v1702_v22 = vld [vmem:[%s2399_s1 + $0x228] ss:$16 sps:$4 sm:$0xff]   ;;  %v1707_v23 = vld [vmem:[%s2399_s1 + $0x244] ss:$16 sps:$4 sm:$0xff]  }
  0x1a   :  { %v1710_v24 = vld [vmem:[%s2399_s1 + $0x24c] ss:$16 sps:$4 sm:$0xff]   ;;  %v1705_v25 = vld [vmem:[%s2399_s1 + $0x240] ss:$16 sps:$4 sm:$0xff]   ;;  %v1726_v38 = vld [vmem:[%s2399_s1 + $0x2a8] ss:$16 sps:$4 sm:$0xff]  }
  0x1b   :  { %852 = vmatpush1.bf16.msra.mxu0 %v1636_v26  ;;  %934 = vmatpush1.bf16.msra.mxu1 %v1637_v27  ;;  %v1708_v26 = vld [vmem:[%s2399_s1 + $0x248] ss:$16 sps:$4 sm:$0xff]   ;;  %v1713_v27 = vld [vmem:[%s2399_s1 + $0x264] ss:$16 sps:$4 sm:$0xff]   ;;  %v1728_v36 = vld [vmem:[%s2399_s1 + $0x2ac] ss:$16 sps:$4 sm:$0xff]  }
  0x1c   :  { %853 = vmatprep.subr.bf16.mxu0 %v1638_v28  ;;  %935 = vmatprep.subr.bf16.mxu1 %v1640_v29  ;;  %v1716_v28 = vld [vmem:[%s2399_s1 + $0x26c] ss:$16 sps:$4 sm:$0xff]   ;;  %v1711_v29 = vld [vmem:[%s2399_s1 + $0x260] ss:$16 sps:$4 sm:$0xff]   ;;  %v1732_v42 = vld [vmem:[%s2399_s1 + $0x2c8] ss:$16 sps:$4 sm:$0xff]  }
  0x1d   :  { %v1723_v37 = vld [vmem:[%s2399_s1 + $0x2a0] ss:$16 sps:$4 sm:$0xff]   ;;  %v1746_v49 = vld [vmem:[%s2399_s1 + $0x30c] ss:$16 sps:$4 sm:$0xff]   ;;  %v1749_v52 = vld [vmem:[%s2399_s1 + $0x324] ss:$16 sps:$4 sm:$0xff]  }
  0x1e   :  { %v1747_v54 = vld [vmem:[%s2399_s1 + $0x320] ss:$16 sps:$4 sm:$0xff]   ;;  %v1761_v60 = vld [vmem:[%s2399_s1 + $0x364] ss:$16 sps:$4 sm:$0xff]  }
  0x1f   :  { %854 = vmatpush1.bf16.msra.mxu0 %v1642_v30  ;;  %936 = vmatpush1.bf16.msra.mxu1 %v1643_v31  ;;  %v1714_v30 = vld [vmem:[%s2399_s1 + $0x268] ss:$16 sps:$4 sm:$0xff]   ;;  %v1719_v31 = vld [vmem:[%s2399_s1 + $0x284] ss:$16 sps:$4 sm:$0xff]   ;;  %v1753_v58 = vld [vmem:[%s2399_s1 + $0x340] ss:$16 sps:$4 sm:$0xff]  }
  0x20   :  { %855 = vmatprep.subr.bf16.mxu0 %v1644_v32  ;;  %937 = vmatprep.subr.bf16.mxu1 %v1646_v33  ;;  %v1722_v32 = vld [vmem:[%s2399_s1 + $0x28c] ss:$16 sps:$4 sm:$0xff]   ;;  %v1717_v33 = vld [vmem:[%s2399_s1 + $0x280] ss:$16 sps:$4 sm:$0xff]   ;;  %v1773_v4 = vld [vmem:[%s2399_s1 + $0x3a4] ss:$16 sps:$4 sm:$0xff]  }
  0x23   :  { %856 = vmatpush1.bf16.msra.mxu0 %v1648_v34  ;;  %938 = vmatpush1.bf16.msra.mxu1 %v1649_v35  ;;  %v1720_v34 = vld [vmem:[%s2399_s1 + $0x288] ss:$16 sps:$4 sm:$0xff]   ;;  %v1725_v35 = vld [vmem:[%s2399_s1 + $0x2a4] ss:$16 sps:$4 sm:$0xff]  }
  0x24   :  { %857 = vmatprep.subr.bf16.mxu0 %v1650_v39  ;;  %939 = vmatprep.subr.bf16.mxu1 %v1652_v40  ;;  %v1731_v39 = vld [vmem:[%s2399_s1 + $0x2c4] ss:$16 sps:$4 sm:$0xff]   ;;  %v1734_v40 = vld [vmem:[%s2399_s1 + $0x2cc] ss:$16 sps:$4 sm:$0xff]  }
  0x27   :  { %858 = vmatpush1.bf16.msra.mxu0 %v1654_v41  ;;  %940 = vmatpush1.bf16.msra.mxu1 %v1655_v44  ;;  %v1729_v41 = vld [vmem:[%s2399_s1 + $0x2c0] ss:$16 sps:$4 sm:$0xff]   ;;  %v1737_v44 = vld [vmem:[%s2399_s1 + $0x2e4] ss:$16 sps:$4 sm:$0xff]  }
  0x28   :  { %859 = vmatprep.subr.bf16.mxu0 %v1656_v45  ;;  %941 = vmatprep.subr.bf16.mxu1 %v1658_v46  ;;  %v1740_v45 = vld [vmem:[%s2399_s1 + $0x2ec] ss:$16 sps:$4 sm:$0xff]   ;;  %v1735_v46 = vld [vmem:[%s2399_s1 + $0x2e0] ss:$16 sps:$4 sm:$0xff]  }
  0x2b   :  { %860 = vmatpush1.bf16.msra.mxu0 %v1660_v47  ;;  %942 = vmatpush1.bf16.msra.mxu1 %v1661_v48  ;;  %v1738_v47 = vld [vmem:[%s2399_s1 + $0x2e8] ss:$16 sps:$4 sm:$0xff]   ;;  %v1743_v48 = vld [vmem:[%s2399_s1 + $0x304] ss:$16 sps:$4 sm:$0xff]  }
  0x2c   :  { %861 = vmatprep.subr.bf16.mxu0 %v1662_v50  ;;  %943 = vmatprep.subr.bf16.mxu1 %v1664_v51  ;;  %v1741_v50 = vld [vmem:[%s2399_s1 + $0x300] ss:$16 sps:$4 sm:$0xff]   ;;  %v1744_v51 = vld [vmem:[%s2399_s1 + $0x308] ss:$16 sps:$4 sm:$0xff]  }
  0x2f   :  { %862 = vmatpush1.bf16.msra.mxu0 %v1666_v53  ;;  %944 = vmatpush1.bf16.msra.mxu1 %v1667_v55  ;;  %v1752_v53 = vld [vmem:[%s2399_s1 + $0x32c] ss:$16 sps:$4 sm:$0xff]   ;;  %v1750_v55 = vld [vmem:[%s2399_s1 + $0x328] ss:$16 sps:$4 sm:$0xff]  }
  0x30   :  { %863 = vmatprep.subr.bf16.mxu0 %v1668_v56  ;;  %945 = vmatprep.subr.bf16.mxu1 %v1670_v57  ;;  %v1755_v56 = vld [vmem:[%s2399_s1 + $0x344] ss:$16 sps:$4 sm:$0xff]   ;;  %v1758_v57 = vld [vmem:[%s2399_s1 + $0x34c] ss:$16 sps:$4 sm:$0xff]  }
  0x33   :  { %864 = vmatpush1.bf16.msra.mxu0 %v1672_v59  ;;  %946 = vmatpush1.bf16.msra.mxu1 %v1673_v61  ;;  %v1756_v59 = vld [vmem:[%s2399_s1 + $0x348] ss:$16 sps:$4 sm:$0xff]   ;;  %v1764_v61 = vld [vmem:[%s2399_s1 + $0x36c] ss:$16 sps:$4 sm:$0xff]  }
  0x34   :  { %865 = vmatprep.subr.bf16.mxu0 %v1674_v62  ;;  %947 = vmatprep.subr.bf16.mxu1 %v1676_v63  ;;  %v1759_v62 = vld [vmem:[%s2399_s1 + $0x360] ss:$16 sps:$4 sm:$0xff]   ;;  %v1762_v63 = vld [vmem:[%s2399_s1 + $0x368] ss:$16 sps:$4 sm:$0xff]  }
  0x37   :  { %866 = vmatpush1.bf16.msra.mxu0 %v1678_v0  ;;  %948 = vmatpush1.bf16.msra.mxu1 %v1679_v1  ;;  %v1767_v0 = vld [vmem:[%s2399_s1 + $0x384] ss:$16 sps:$4 sm:$0xff]   ;;  %v1770_v1 = vld [vmem:[%s2399_s1 + $0x38c] ss:$16 sps:$4 sm:$0xff]  }
  0x38   :  { %867 = vmatprep.subr.bf16.mxu0 %v1680_v2  ;;  %949 = vmatprep.subr.bf16.mxu1 %v1682_v3  ;;  %v1765_v2 = vld [vmem:[%s2399_s1 + $0x380] ss:$16 sps:$4 sm:$0xff]   ;;  %v1768_v3 = vld [vmem:[%s2399_s1 + $0x388] ss:$16 sps:$4 sm:$0xff]  }
  0x3b   :  { %868 = vmatpush1.bf16.msra.mxu0 %v1684_v5  ;;  %950 = vmatpush1.bf16.msra.mxu1 %v1685_v6  ;;  %v1776_v5 = vld [vmem:[%s2399_s1 + $0x3ac] ss:$16 sps:$4 sm:$0xff]   ;;  %v1771_v6 = vld [vmem:[%s2399_s1 + $0x3a0] ss:$16 sps:$4 sm:$0xff]  }
  0x3c   :  { %869 = vmatprep.subr.bf16.mxu0 %v1686_v7  ;;  %951 = vmatprep.subr.bf16.mxu1 %v1688_v8  ;;  %v1774_v7 = vld [vmem:[%s2399_s1 + $0x3a8] ss:$16 sps:$4 sm:$0xff]  }
  0x3f   :  { %870 = vmatpush1.bf16.msra.mxu0 %v1690_v10  ;;  %952 = vmatpush1.bf16.msra.mxu1 %v1691_v11 }
  0x40   :  { %880 = vmatprep.subr.bf16.mxu0 %v1695_v12  ;;  %962 = vmatprep.subr.bf16.mxu1 %v1698_v13 }
  0x42   :  { %872 = vmatmul.mubr.bf16.vlgmr.msra.gmra.mrb[0].mxu0 %v45_v16  ;;  %954 = vmatmul.mubr.bf16.vlgmr.msra.gmra.mrb[0].mxu1 %v45_v16 }
  0x43   :  { %881 = vmatpush1.bf16.msra.mxu0 %v1693_v15  ;;  %963 = vmatpush1.bf16.msra.mxu1 %v1696_v17 }
  0x44   :  { %882 = vmatprep.subr.bf16.mxu0 %v1701_v18  ;;  %964 = vmatprep.subr.bf16.mxu1 %v1704_v19 }
  0x45   :  { %912 = vmatprep.mubr.bf16.mxu0 %v48_v20  ;;  %994 = vmatprep.mubr.bf16.mxu1 %v48_v20 }
  0x47   :  { %883 = vmatpush1.bf16.msra.mxu0 %v1699_v21  ;;  %965 = vmatpush1.bf16.msra.mxu1 %v1702_v22 }
  0x48   :  { %884 = vmatprep.subr.bf16.mxu0 %v1707_v23  ;;  %966 = vmatprep.subr.bf16.mxu1 %v1710_v24 }
  0x4b   :  { %885 = vmatpush1.bf16.msra.mxu0 %v1705_v25  ;;  %967 = vmatpush1.bf16.msra.mxu1 %v1708_v26 }
  0x4c   :  { %886 = vmatprep.subr.bf16.mxu0 %v1713_v27  ;;  %968 = vmatprep.subr.bf16.mxu1 %v1716_v28 }
  0x4f   :  { %887 = vmatpush1.bf16.msra.mxu0 %v1711_v29  ;;  %969 = vmatpush1.bf16.msra.mxu1 %v1714_v30 }
  0x50   :  { %888 = vmatprep.subr.bf16.mxu0 %v1719_v31  ;;  %970 = vmatprep.subr.bf16.mxu1 %v1722_v32 }
  0x53   :  { %889 = vmatpush1.bf16.msra.mxu0 %v1717_v33  ;;  %971 = vmatpush1.bf16.msra.mxu1 %v1720_v34 }
  0x54   :  { %890 = vmatprep.subr.bf16.mxu0 %v1725_v35  ;;  %972 = vmatprep.subr.bf16.mxu1 %v1728_v36 }
  0x57   :  { %891 = vmatpush1.bf16.msra.mxu0 %v1723_v37  ;;  %973 = vmatpush1.bf16.msra.mxu1 %v1726_v38 }
  0x58   :  { %892 = vmatprep.subr.bf16.mxu0 %v1731_v39  ;;  %974 = vmatprep.subr.bf16.mxu1 %v1734_v40 }
  0x5b   :  { %893 = vmatpush1.bf16.msra.mxu0 %v1729_v41  ;;  %975 = vmatpush1.bf16.msra.mxu1 %v1732_v42 }
  0x5c   :  { %894 = vmatprep.subr.bf16.mxu0 %v1737_v44  ;;  %976 = vmatprep.subr.bf16.mxu1 %v1740_v45 }
  0x5f   :  { %895 = vmatpush1.bf16.msra.mxu0 %v1735_v46  ;;  %977 = vmatpush1.bf16.msra.mxu1 %v1738_v47 }
  0x60   :  { %896 = vmatprep.subr.bf16.mxu0 %v1743_v48  ;;  %978 = vmatprep.subr.bf16.mxu1 %v1746_v49 }
  0x63   :  { %897 = vmatpush1.bf16.msra.mxu0 %v1741_v50  ;;  %979 = vmatpush1.bf16.msra.mxu1 %v1744_v51 }
  0x64   :  { %898 = vmatprep.subr.bf16.mxu0 %v1749_v52  ;;  %980 = vmatprep.subr.bf16.mxu1 %v1752_v53 }
  0x67   :  { %899 = vmatpush1.bf16.msra.mxu0 %v1747_v54  ;;  %981 = vmatpush1.bf16.msra.mxu1 %v1750_v55 }
  0x68   :  { %900 = vmatprep.subr.bf16.mxu0 %v1755_v56  ;;  %982 = vmatprep.subr.bf16.mxu1 %v1758_v57 }
  0x6b   :  { %901 = vmatpush1.bf16.msra.mxu0 %v1753_v58  ;;  %983 = vmatpush1.bf16.msra.mxu1 %v1756_v59 }
  0x6c   :  { %902 = vmatprep.subr.bf16.mxu0 %v1761_v60  ;;  %984 = vmatprep.subr.bf16.mxu1 %v1764_v61 }
  0x6f   :  { %903 = vmatpush1.bf16.msra.mxu0 %v1759_v62  ;;  %985 = vmatpush1.bf16.msra.mxu1 %v1762_v63 }
  0x70   :  { %904 = vmatprep.subr.bf16.mxu0 %v1767_v0  ;;  %986 = vmatprep.subr.bf16.mxu1 %v1770_v1 }
  0x73   :  { %905 = vmatpush1.bf16.msra.mxu0 %v1765_v2  ;;  %987 = vmatpush1.bf16.msra.mxu1 %v1768_v3 }
  0x74   :  { %10 = vsyncpa [#allocation3], 0  ;;  %906 = vmatprep.subr.bf16.mxu0 %v1773_v4  ;;  %988 = vmatprep.subr.bf16.mxu1 %v1776_v5  ;;  %v1779_v8 = vld [vmem:[%s2399_s1 + $0x3c4] ss:$16 sps:$4 sm:$0xff]   ;;  %v1782_v10 = vld [vmem:[%s2399_s1 + $0x3cc] ss:$16 sps:$4 sm:$0xff]   ;;  %v47_v19 = vpack.c.bf16 %v2073_v9, %v2073_v9 }
  0x75   :  { %v1777_v11 = vld [vmem:[%s2399_s1 + $0x3c0] ss:$16 sps:$4 sm:$0xff]   ;;  %v1780_v12 = vld [vmem:[%s2399_s1 + $0x3c8] ss:$16 sps:$4 sm:$0xff]   ;;  %v1785_v13 = vld [vmem:[%s2399_s1 + $0x3e4] ss:$16 sps:$4 sm:$0xff]  }
  0x76   :  { %v1788_v14 = vld [vmem:[%s2399_s1 + $0x3ec] ss:$16 sps:$4 sm:$0xff]   ;;  %v1783_v15 = vld [vmem:[%s2399_s1 + $0x3e0] ss:$16 sps:$4 sm:$0xff]   ;;  %v1786_v16 = vld [vmem:[%s2399_s1 + $0x3e8] ss:$16 sps:$4 sm:$0xff]  }
  0x77   :  { %907 = vmatpush1.bf16.msra.mxu0 %v1771_v6  ;;  %989 = vmatpush1.bf16.msra.mxu1 %v1774_v7  ;;  %v1789_v17 = vld [vmem:[%s2401_s3 + $0x40] sm:$0xff]   ;;  %v1793_v22 = vld [vmem:[%s2401_s3 + $0x48] sm:$0xff]   ;;  %v1797_v25 = vld [vmem:[%s2401_s3 + $0x50] sm:$0xff]   ;;  %v181_v50 = vsub.s32 0, %v1998_v43  ;;  %v189_v51 = vsub.s32 2, %v1998_v43  ;;  %v185_v53 = vsub.s32 1, %v1998_v43 }
  0x78   :  { %908 = vmatprep.subr.bf16.mxu0 %v1779_v8  ;;  %990 = vmatprep.subr.bf16.mxu1 %v1782_v10  ;;  %v1790_v18 = vld [vmem:[%s2401_s3 + $0xc0] sm:$0xff]   ;;  %v1794_v9 = vld [vmem:[%s2401_s3 + $0xc8] sm:$0xff]   ;;  %v1798_v26 = vld [vmem:[%s2401_s3 + $0xd0] sm:$0xff]   ;;  %v193_v54 = vsub.s32 3, %v1998_v43  ;;  %vm1350_vm0 = vcmask 156672  }
  0x79   :  { %v1791_v20 = vld [vmem:[%s2401_s3] sm:$0xff]   ;;  %v1795_v23 = vld [vmem:[%s2401_s3 + $0x8] sm:$0xff]   ;;  %v1799_v27 = vld [vmem:[%s2401_s3 + $0x10] sm:$0xff]  }
  0x7a   :  { %v1792_v21 = vld [vmem:[%s2401_s3 + $0x80] sm:$0xff]   ;;  %v1796_v24 = vld [vmem:[%s2401_s3 + $0x88] sm:$0xff]   ;;  %v1800_v28 = vld [vmem:[%s2401_s3 + $0x90] sm:$0xff]  }
  0x7b   :  { %909 = vmatpush1.bf16.msra.mxu0 %v1777_v11  ;;  %991 = vmatpush1.bf16.msra.mxu1 %v1780_v12  ;;  %v1801_v29 = vld [vmem:[%s2401_s3 + $0x58] sm:$0xff]   ;;  %v1805_v33 = vld [vmem:[%s2401_s3 + $0x60] sm:$0xff]   ;;  %v1809_v37 = vld [vmem:[%s2401_s3 + $0x68] sm:$0xff]  }
  0x7c   :  { %910 = vmatprep.subr.bf16.mxu0 %v1785_v13  ;;  %992 = vmatprep.subr.bf16.mxu1 %v1788_v14  ;;  %v1802_v30 = vld [vmem:[%s2401_s3 + $0xd8] sm:$0xff]   ;;  %v1806_v34 = vld [vmem:[%s2401_s3 + $0xe0] sm:$0xff]   ;;  %v1810_v38 = vld [vmem:[%s2401_s3 + $0xe8] sm:$0xff]  }
  0x7d   :  { %v1803_v31 = vld [vmem:[%s2401_s3 + $0x18] sm:$0xff]   ;;  %v1807_v35 = vld [vmem:[%s2401_s3 + $0x20] sm:$0xff]   ;;  %v1811_v39 = vld [vmem:[%s2401_s3 + $0x28] sm:$0xff]  }
  0x7e   :  { %v1804_v32 = vld [vmem:[%s2401_s3 + $0x98] sm:$0xff]   ;;  %v1808_v36 = vld [vmem:[%s2401_s3 + $0xa0] sm:$0xff]   ;;  %v1812_v40 = vld [vmem:[%s2401_s3 + $0xa8] sm:$0xff]  }
  0x7f   :  { %911 = vmatpush1.bf16.msra.mxu0 %v1783_v15  ;;  %993 = vmatpush1.bf16.msra.mxu1 %v1786_v16  ;;  %v1813_v41 = vld [vmem:[%s2401_s3 + $0x70] sm:$0xff]   ;;  %v1817_v46 = vld [vmem:[%s2401_s3 + $0x78] sm:$0xff]   ;;  %v177_v52 = vld [vmem:[%s2400_s2] sm:$0xf] }
  0x80   :  { %1538 = vmatprep.subr.bf16.mxu0 %v1789_v17  ;;  %1560 = vmatprep.subr.bf16.mxu1 %v1790_v18  ;;  %v1814_v42 = vld [vmem:[%s2401_s3 + $0xf0] sm:$0xff]   ;;  %v1818_v47 = vld [vmem:[%s2401_s3 + $0xf8] sm:$0xff]   ;;  %v182_v55 = vrot.slane %v177_v52, %v181_v50  ;;  %v190_v56 = vrot.slane %v177_v52, %v189_v51  ;;  %v186_v57 = vrot.slane %v177_v52, %v185_v53  ;;  %v1505_v13 = vld [vmem:[%s2402_s4] ss:$0 sm:$0xff]  ;;  %s1850_s4 = smov [#allocation2]  }
  0x81   :  { %v1815_v44 = vld [vmem:[%s2401_s3 + $0x30] sm:$0xff]   ;;  %v1819_v48 = vld [vmem:[%s2401_s3 + $0x38] sm:$0xff]   ;;  %v194_v58 = vrot.slane %v177_v52, %v193_v54  ;;  %s1369_s30 = sshll.u32 %s1850_s4, 4  ;;  %s1370_s30 = int_to_ptr.vmem [resolvable:$true] %s1369_s30 }
  0x82   :  { %913 = vmatmul.mubr.bf16.vlgmr.msra.gmra.mrb[0].mxu0 %v47_v19  ;;  %995 = vmatmul.mubr.bf16.vlgmr.msra.gmra.mrb[0].mxu1 %v47_v19  ;;  %v1816_v45 = vld [vmem:[%s2401_s3 + $0xb0] sm:$0xff]   ;;  %v1820_v49 = vld [vmem:[%s2401_s3 + $0xb8] sm:$0xff]   ;;  %s1825_s6 = scalar_lea.vmem %s1370_s30, 32  ;;  %p1830_p1 = scmp.lt.s32.totalorder %s1370_s30, %s1370_s30 }
  0x83   :  { %1539 = vmatpush3.bf16.msra.mxu0 %v1791_v20  ;;  %1561 = vmatpush3.bf16.msra.mxu1 %v1792_v21  ;;  %p1826_p0 = scmp.ne.s32.totalorder %s1370_s30, %s1825_s6  ;;  %p1831_p2 = scmp.lt.s32.totalorder %s1825_s6, %s1825_s6 }
  0x84   :  { %1540 = vmatprep.subr.bf16.mxu0 %v1793_v22  ;;  %1562 = vmatprep.subr.bf16.mxu1 %v1794_v9 }
  0x85   :  { %p1832_p3 = por %p1831_p2, %p1830_p1 }
  0x87   :  { %1541 = vmatpush3.bf16.msra.mxu0 %v1795_v23  ;;  %1563 = vmatpush3.bf16.msra.mxu1 %v1796_v24  ;;  %p1833_p4 = pnand %p1832_p3, %p1826_p0 }
  0x88   :  { %1542 = vmatprep.subr.bf16.mxu0 %v1797_v25  ;;  %1564 = vmatprep.subr.bf16.mxu1 %v1798_v26 }
  0x8b   :  { %1543 = vmatpush3.bf16.msra.mxu0 %v1799_v27  ;;  %1565 = vmatpush3.bf16.msra.mxu1 %v1800_v28 }
  0x8c   :  { %1544 = vmatprep.subr.bf16.mxu0 %v1801_v29  ;;  %1566 = vmatprep.subr.bf16.mxu1 %v1802_v30 }
  0x8f   :  { %1545 = vmatpush3.bf16.msra.mxu0 %v1803_v31  ;;  %1567 = vmatpush3.bf16.msra.mxu1 %v1804_v32 }
  0x90   :  { %1546 = vmatprep.subr.bf16.mxu0 %v1805_v33  ;;  %1568 = vmatprep.subr.bf16.mxu1 %v1806_v34 }
  0x93   :  { %1547 = vmatpush3.bf16.msra.mxu0 %v1807_v35  ;;  %1569 = vmatpush3.bf16.msra.mxu1 %v1808_v36 }
  0x94   :  { %1548 = vmatprep.subr.bf16.mxu0 %v1809_v37  ;;  %1570 = vmatprep.subr.bf16.mxu1 %v1810_v38 }
  0x97   :  { %1549 = vmatpush3.bf16.msra.mxu0 %v1811_v39  ;;  %1571 = vmatpush3.bf16.msra.mxu1 %v1812_v40 }
  0x98   :  { %1550 = vmatprep.subr.bf16.mxu0 %v1813_v41  ;;  %1572 = vmatprep.subr.bf16.mxu1 %v1814_v42 }
  0x9b   :  { %1551 = vmatpush3.bf16.msra.mxu0 %v1815_v44  ;;  %1573 = vmatpush3.bf16.msra.mxu1 %v1816_v45 }
  0x9c   :  { %1552 = vmatprep.subr.bf16.mxu0 %v1817_v46  ;;  %1574 = vmatprep.subr.bf16.mxu1 %v1818_v47 }
  0x9f   :  { %1553 = vmatpush3.bf16.msra.mxu0 %v1819_v48  ;;  %1575 = vmatpush3.bf16.msra.mxu1 %v1820_v49 }
 0x155   :  { %v914_v59 = vpop.f32.mrb[0].mxu0  ;;  %v996_v60 = vpop.f32.mrb[0].mxu1 }
 0x156   :  { %v1582_v61 = vadd.f32 %v914_v59, %v182_v55  ;;  %v1584_v62 = vadd.f32 %v996_v60, %v190_v56  ;;  %v916_v63 = vpop.f32.mrb[1].mxu0  ;;  %v998_v0 = vpop.f32.mrb[1].mxu1 }
 0x157   :  { %v1583_v1 = vadd.f32 %v916_v63, %v186_v57  ;;  %v1585_v2 = vadd.f32 %v998_v0, %v194_v58  ;;  %v918_v3 = vpop.f32.mrb[2].mxu0  ;;  %v1000_v4 = vpop.f32.mrb[2].mxu1 }
 0x158   :  { %v919_v5 = vpop.f32.mrb[3].mxu0  ;;  %v1001_v6 = vpop.f32.mrb[3].mxu1  ;;  %v1003_v10 = vpack.c.bf16 %v1582_v61, %v1582_v61  ;;  %v1005_v43 = vpack.c.bf16 %v1584_v62, %v1584_v62 }
 0x159   :  { %v1004_v7 = vpack.c.bf16 %v1583_v1, %v1583_v1  ;;  %v1006_v8 = vpack.c.bf16 %v1585_v2, %v1585_v2 }
 0x15b   :  { %1302 = vmatprep.mubr.bf16.mxu0 %v1004_v7  ;;  %1342 = vmatprep.mubr.bf16.mxu1 %v1006_v8 }
 0x15c   :  { %1303 = vmatmul.mubr.bf16.vlgmr.msra.gmra.mrb[4].mxu0 %v1003_v10  ;;  %1343 = vmatmul.mubr.bf16.vlgmr.msra.gmra.mrb[4].mxu1 %v1005_v43 }
 0x22f   :  { %v1554_v11 = vpop.f32.mrb[4].mxu0  ;;  %v1576_v12 = vpop.f32.mrb[4].mxu1 }
 0x230   :  { %v1555_v14 = vpop.f32.mrb[5].mxu0  ;;  %v1577_v15 = vpop.f32.mrb[5].mxu1 }
 0x231   :  { %v1556_v16 = vadd.f32 %v1555_v14, %v1554_v11  ;;  %v1578_v17 = vadd.f32 %v1577_v15, %v1576_v12  ;;  %v1557_v18 = vpop.f32.mrb[6].mxu0  ;;  %v1579_v19 = vpop.f32.mrb[6].mxu1 }
 0x232   :  { %v1558_v20 = vpop.f32.mrb[7].mxu0  ;;  %v1580_v21 = vpop.f32.mrb[7].mxu1 }
 0x233   :  { %v1305_v22 = vadd.f32 %v1556_v16, %v1505_v13 }
 0x235   :  { %v1345_v9 = vadd.f32 %v1578_v17, %v1305_v22 }
 0x237   :  { %v1351_v23 = vsel %vm1350_vm0, %v1345_v9, -inf }
 0x238   :  { %1352 = vmax.xlane.f32.xlu0 %v1351_v23 }
 0x2c5   :  { %v1353_v24 = vpop.xlane.xlu0 %1352 }
 0x2c6   :  { %v1354_v25 = vsub.f32 %v1345_v9, %v1353_v24 }
 0x2c8   :  { %v1355_v26 = vmul.f32 1.442695, %v1354_v25 }
 0x2ca   :  { %1821 = vpow2.f32 %v1355_v26 }
 0x2d4   :  { %v1822_v27 = vpop.eup %1821 }
 0x2d5   :  { %v1357_v28 = vsel %vm1350_vm0, %v1822_v27, 0.0 }
 0x2d6   :  { %1358 = vadd.xlane.f32.xlu0 %v1357_v28 }
 0x363   :  { %v1359_v29 = vpop.xlane.xlu0 %1358 }
 0x364   :  { %1823 = vrcp.f32 %v1359_v29 }
 0x36e   :  { %v1824_v30 = vpop.eup %1823 }
 0x36f   :  { %v1361_v31 = vmul.f32 %v1824_v30, %v1822_v27 }
 0x371   :  { %1362 = vst.msk [vmem:[#allocation2] sm:$0x3] %vm1350_vm0, %v1361_v31 }
 0x372   :  { %1836 = shalt.err (!%p1833_p4)
}
 0x373   :  { %s1837_s9 = scalar_lea.hbm %s2403_s5, 32 }
 0x374   :  { %p1838_p5 = scmp.ne.s32.totalorder %s2403_s5, %s1837_s9  ;;  %p1841_p6 = scmp.lt.u32.totalorder %s1837_s9, %s2403_s5 }
 0x376   :  { %p1843_p7 = pnand %p1841_p6, %p1838_p5 }
 0x378   :  { %1846 = shalt.err (!%p1843_p7)
}
 0x379   :  { %1372 = dma.vmem_to_hbm [thread:$0]  %s1370_s30, 32, %s2403_s5, [#allocation3]  }
 0x37a   :  { %1847 = dma.done.wait [#allocation3], 32  }
 0x37b   :  { %1848 = vsyncadd [#allocation3], 4294967264 }
 0x37c   :  { %1376 = vsyncpa [#allocation3], 1 }

</bundles_post_ra>
